<compile_context>
chip_gen: v5e
topology: v5e:2x2
jax: 0.10.0
libtpu: 0.0.40
codegen_flags: <defaults>
</compile_context>

<pallas_src>
import jax
import jax.numpy as jnp
import numpy as np
from jax.experimental import pallas as pl
from jax.experimental.pallas import tpu as pltpu

NEG_SLOPE = 0.01     # nn.LeakyReLU default
BN_EPS = 1e-5        # nn.BatchNorm1d default

DIMS = [2, 8, 16, 32, 64, 128, 10000]
N_OUT = DIMS[-1]
N_PAD = 10240        # w6/b6 padded to a multiple of every candidate TILE_N

# Row offsets of w1..w5 inside the packed (128,128) weight array.
ROW0 = (0, 8, 16, 32, 64)


def _pick_tile_n():
    """5120 (2 steps) on single-TC v5e/v6e; 2560 (4 steps) on v7x / v4 / unknown."""
    try:
        kind = jax.devices()[0].device_kind.lower()
    except Exception:
        return 2560
    if any(t in kind for t in ("v5e", "v5 lite", "v5lite", "v6e", "v6 lite", "v6lite")):
        return 5120
    return 2560


TILE_N = _pick_tile_n()


def _leaky_relu(x):
    return jnp.where(x >= 0, x, NEG_SLOPE * x)


def _batchnorm_train(x, gamma, beta):
    # PyTorch BatchNorm1d training forward: biased batch variance.
    mean = jnp.mean(x, axis=0, keepdims=True)
    var = jnp.mean((x - mean) ** 2, axis=0, keepdims=True)
    return (x - mean) * jax.lax.rsqrt(var + BN_EPS) * gamma + beta


def fused_kernel(x_ref, wpack_ref, vpack_ref, w6_ref, b6_ref, out_ref):
    """Per grid step: recompute tiny front-end h (8x128), then one lane-dense
    bf16 weight tile of the 128 x 10240 head matmul + bias + ReLU."""
    h = x_ref[...]
    for i in range(5):
        fi, fo = DIMS[i], DIMS[i + 1]
        r0 = ROW0[i]
        w = wpack_ref[r0:r0 + fi, 0:fo]
        b = vpack_ref[i:i + 1, 0:fo]
        g = vpack_ref[5 + i:6 + i, 0:fo]
        be = vpack_ref[10 + i:11 + i, 0:fo]
        h = jnp.dot(h, w, preferred_element_type=jnp.float32) + b
        h = _leaky_relu(h)
        h = _batchnorm_train(h, g, be)
    h = h.astype(jnp.bfloat16)
    z = jnp.dot(h, w6_ref[...], preferred_element_type=jnp.float32) + b6_ref[...]
    out_ref[...] = jnp.maximum(z, 0.0)


def init_params(key):
    """Deterministic PyTorch-style Linear init (U(-1/sqrt(fan_in), +1/sqrt(fan_in)))."""
    params = []
    for i in range(6):
        fan_in, fan_out = DIMS[i], DIMS[i + 1]
        key, kw, kb = jax.random.split(key, 3)
        bound = 1.0 / np.sqrt(fan_in)
        w = jax.random.uniform(kw, (fan_in, fan_out), jnp.float32, -bound, bound)
        b = jax.random.uniform(kb, (1, fan_out), jnp.float32, -bound, bound)
        params.append((w, b))
    # BatchNorm affine params (fresh module: gamma=1, beta=0) for the 5 BN layers.
    bn = [(jnp.ones((1, DIMS[i + 1]), jnp.float32),
           jnp.zeros((1, DIMS[i + 1]), jnp.float32)) for i in range(5)]
    return params, bn


def pack_frontend(params, bn):
    """One-time prep (outside jit): pack the 21 tiny front-end params into 2 arrays.

    wpack (128,128) f32:  w1 @ rows 0:2, w2 @ 8:16, w3 @ 16:32, w4 @ 32:64, w5 @ 64:128
                          (each in columns 0:fan_out, rest zero).
    vpack (16,128)  f32:  rows 0-4 = b1..b5, rows 5-9 = gamma1..5, rows 10-14 = beta1..5.
    """
    wpack = np.zeros((128, 128), np.float32)
    vpack = np.zeros((16, 128), np.float32)
    for i in range(5):
        fi, fo = DIMS[i], DIMS[i + 1]
        w, b = params[i]
        g, be = bn[i]
        wpack[ROW0[i]:ROW0[i] + fi, :fo] = np.asarray(w)
        vpack[i, :fo] = np.asarray(b).reshape(-1)
        vpack[5 + i, :fo] = np.asarray(g).reshape(-1)
        vpack[10 + i, :fo] = np.asarray(be).reshape(-1)
    return jnp.asarray(wpack), jnp.asarray(vpack)


def prepare_head_weights(params):
    """One-time prep (outside jit): zero-pad head weights to N_PAD, cast w6 to bf16."""
    w6, b6 = params[5]
    w6p = jnp.zeros((DIMS[5], N_PAD), jnp.bfloat16).at[:, :N_OUT].set(
        w6.astype(jnp.bfloat16))
    b6p = jnp.zeros((1, N_PAD), jnp.float32).at[:, :N_OUT].set(b6)
    return w6p, b6p


@jax.jit
def neuronet_forward(x, wpack, vpack, w6p, b6p):
    B = x.shape[0]
    n_tiles = pl.cdiv(N_OUT, TILE_N)   # partial last output tile is masked by Pallas
    return pl.pallas_call(
        fused_kernel,
        out_shape=jax.ShapeDtypeStruct((B, N_OUT), jnp.float32),
        grid_spec=pltpu.PrefetchScalarGridSpec(
            num_scalar_prefetch=0,
            grid=(n_tiles,),
            in_specs=[
                pl.BlockSpec((B, DIMS[0]), lambda j: (0, 0)),        # x (8,2)
                pl.BlockSpec((128, 128), lambda j: (0, 0)),          # packed w1..w5
                pl.BlockSpec((16, 128), lambda j: (0, 0)),           # packed b/gamma/beta
                pl.BlockSpec((DIMS[5], TILE_N), lambda j: (0, j)),   # w6 tile (bf16)
                pl.BlockSpec((1, TILE_N), lambda j: (0, j)),         # b6 tile
            ],
            out_specs=pl.BlockSpec((B, TILE_N), lambda j: (0, j)),
        ),
        compiler_params=pltpu.CompilerParams(
            # No cross-step state (h recomputed per step) -> megacore-safe on v7x;
            # measured no-op on single-TC v5e/v6e.
            dimension_semantics=("parallel",)),
    )(x, wpack, vpack, w6p, b6p)


def neuronet_reference(x, params, bn):
    """Plain-JAX (f32) reference for correctness checking."""
    h = x
    for i in range(5):
        w, b = params[i]
        g, be = bn[i]
        h = h @ w + b
        h = _leaky_relu(h)
        h = _batchnorm_train(h, g, be)
    w6, b6 = params[5]
    return jnp.maximum(h @ w6 + b6, 0.0)


if __name__ == "__main__":
    key = jax.random.PRNGKey(0)
    key, kx, kp = jax.random.split(key, 3)

    B = 8   # sublane-aligned; BatchNorm1d (train mode) needs batch > 1
    x = jax.random.normal(kx, (B, DIMS[0]), jnp.float32)
    params, bn = init_params(kp)

    # One-time, outside-jit parameter prep (pack + pad + bf16 cast).
    wpack, vpack = pack_frontend(params, bn)
    w6p, b6p = prepare_head_weights(params)

    out = neuronet_forward(x, wpack, vpack, w6p, b6p)
    out = jax.block_until_ready(out)
    assert out.shape == (B, N_OUT), out.shape

    ref = neuronet_reference(x, params, bn)
    # bf16 head weights / bf16 h introduce ~1e-3-level error; tolerance has headroom.
    np.testing.assert_allclose(np.asarray(out), np.asarray(ref), rtol=2e-2, atol=2e-2)

    print("KERNEL_OK")
</pallas_src>

<mosaic_0001>
module attributes {stable_mosaic.version = 11 : i64} {
  func.func @fused_kernel(%arg0: i32, %arg1: memref<8x2xf32, #tpu.memory_space<vmem>>, %arg2: memref<128x128xf32, #tpu.memory_space<vmem>>, %arg3: memref<16x128xf32, #tpu.memory_space<vmem>>, %arg4: memref<128x2560xbf16, #tpu.memory_space<vmem>>, %arg5: memref<1x2560xf32, #tpu.memory_space<vmem>>, %arg6: memref<8x2560xf32, #tpu.memory_space<vmem>>) attributes {dimension_semantics = [#tpu.dimension_semantics<parallel>], iteration_bounds = array<i64: 4>, scalar_prefetch = 0 : i64, scratch_operands = 0 : i64, tpu.core_type = #tpu.core_type<tc>, window_params = [{pipeline_mode = #tpu.pipeline_mode<synchronous>, transform_indices = @transform_0, window_bounds = array<i64: 8, 2>}, {pipeline_mode = #tpu.pipeline_mode<synchronous>, transform_indices = @transform_1, window_bounds = array<i64: 128, 128>}, {pipeline_mode = #tpu.pipeline_mode<synchronous>, transform_indices = @transform_2, window_bounds = array<i64: 16, 128>}, {transform_indices = @transform_3, window_bounds = array<i64: 128, 2560>}, {transform_indices = @transform_4, window_bounds = array<i64: 1, 2560>}, {transform_indices = @transform_5, window_bounds = array<i64: 8, 2560>}]} {
    %c0 = arith.constant 0 : index
    %c0_0 = arith.constant 0 : index
    %0 = vector.load %arg1[%c0, %c0_0] : memref<8x2xf32, #tpu.memory_space<vmem>>, vector<8x2xf32>
    %c0_1 = arith.constant 0 : index
    %c0_2 = arith.constant 0 : index
    %1 = vector.load %arg2[%c0_1, %c0_2] : memref<128x128xf32, #tpu.memory_space<vmem>>, vector<2x8xf32>
    %c0_3 = arith.constant 0 : index
    %c0_4 = arith.constant 0 : index
    %2 = vector.load %arg3[%c0_3, %c0_4] : memref<16x128xf32, #tpu.memory_space<vmem>>, vector<1x8xf32>
    %c5 = arith.constant 5 : index
    %c0_5 = arith.constant 0 : index
    %3 = vector.load %arg3[%c5, %c0_5] : memref<16x128xf32, #tpu.memory_space<vmem>>, vector<1x8xf32>
    %c10 = arith.constant 10 : index
    %c0_6 = arith.constant 0 : index
    %4 = vector.load %arg3[%c10, %c0_6] : memref<16x128xf32, #tpu.memory_space<vmem>>, vector<1x8xf32>
    %cst = arith.constant dense<0.000000e+00> : vector<8x8xf32>
    %5 = tpu.matmul %0, %1, %cst {dimension_numbers = #tpu.dot_dimension_numbers<[1], [0], [0], [1], [0, 0, 1, 1], [], []>} : vector<8x2xf32>, vector<2x8xf32>, vector<8x8xf32> -> vector<8x8xf32>
    %6 = vector.broadcast %2 : vector<1x8xf32> to vector<8x8xf32>
    %7 = arith.addf %5, %6 : vector<8x8xf32>
    %cst_7 = arith.constant 0.000000e+00 : f32
    %8 = vector.broadcast %cst_7 : f32 to vector<8x8xf32>
    %9 = arith.cmpf oge, %7, %8 : vector<8x8xf32>
    %cst_8 = arith.constant 0.00999999977 : f32
    %10 = vector.broadcast %cst_8 : f32 to vector<8x8xf32>
    %11 = arith.mulf %10, %7 : vector<8x8xf32>
    %12 = arith.select %9, %7, %11 : vector<8x8xi1>, vector<8x8xf32>
    %cst_9 = arith.constant dense<0.000000e+00> : vector<8xf32>
    %13 = vector.multi_reduction <add>, %12, %cst_9 [0] : vector<8x8xf32> to vector<8xf32>
    %14 = vector.shape_cast %13 : vector<8xf32> to vector<1x8xf32>
    %cst_10 = arith.constant 8.000000e+00 : f32
    %15 = vector.broadcast %cst_10 : f32 to vector<1x8xf32>
    %16 = arith.divf %14, %15 : vector<1x8xf32>
    %17 = vector.broadcast %16 : vector<1x8xf32> to vector<8x8xf32>
    %18 = arith.subf %12, %17 : vector<8x8xf32>
    %19 = arith.mulf %18, %18 : vector<8x8xf32>
    %cst_11 = arith.constant dense<0.000000e+00> : vector<8xf32>
    %20 = vector.multi_reduction <add>, %19, %cst_11 [0] : vector<8x8xf32> to vector<8xf32>
    %21 = vector.shape_cast %20 : vector<8xf32> to vector<1x8xf32>
    %cst_12 = arith.constant 8.000000e+00 : f32
    %22 = vector.broadcast %cst_12 : f32 to vector<1x8xf32>
    %23 = arith.divf %21, %22 : vector<1x8xf32>
    %24 = vector.broadcast %16 : vector<1x8xf32> to vector<8x8xf32>
    %25 = arith.subf %12, %24 : vector<8x8xf32>
    %cst_13 = arith.constant 9.99999974E-6 : f32
    %26 = vector.broadcast %cst_13 : f32 to vector<1x8xf32>
    %27 = arith.addf %23, %26 : vector<1x8xf32>
    %28 = math.rsqrt %27 : vector<1x8xf32>
    %29 = vector.broadcast %28 : vector<1x8xf32> to vector<8x8xf32>
    %30 = arith.mulf %25, %29 : vector<8x8xf32>
    %31 = vector.broadcast %3 : vector<1x8xf32> to vector<8x8xf32>
    %32 = arith.mulf %30, %31 : vector<8x8xf32>
    %33 = vector.broadcast %4 : vector<1x8xf32> to vector<8x8xf32>
    %34 = arith.addf %32, %33 : vector<8x8xf32>
    %c8 = arith.constant 8 : index
    %c0_14 = arith.constant 0 : index
    %35 = vector.load %arg2[%c8, %c0_14] : memref<128x128xf32, #tpu.memory_space<vmem>>, vector<8x16xf32>
    %c1 = arith.constant 1 : index
    %c0_15 = arith.constant 0 : index
    %36 = vector.load %arg3[%c1, %c0_15] : memref<16x128xf32, #tpu.memory_space<vmem>>, vector<1x16xf32>
    %c6 = arith.constant 6 : index
    %c0_16 = arith.constant 0 : index
    %37 = vector.load %arg3[%c6, %c0_16] : memref<16x128xf32, #tpu.memory_space<vmem>>, vector<1x16xf32>
    %c11 = arith.constant 11 : index
    %c0_17 = arith.constant 0 : index
    %38 = vector.load %arg3[%c11, %c0_17] : memref<16x128xf32, #tpu.memory_space<vmem>>, vector<1x16xf32>
    %cst_18 = arith.constant dense<0.000000e+00> : vector<8x16xf32>
    %39 = tpu.matmul %34, %35, %cst_18 {dimension_numbers = #tpu.dot_dimension_numbers<[1], [0], [0], [1], [0, 0, 1, 1], [], []>} : vector<8x8xf32>, vector<8x16xf32>, vector<8x16xf32> -> vector<8x16xf32>
    %40 = vector.broadcast %36 : vector<1x16xf32> to vector<8x16xf32>
    %41 = arith.addf %39, %40 : vector<8x16xf32>
    %cst_19 = arith.constant 0.000000e+00 : f32
    %42 = vector.broadcast %cst_19 : f32 to vector<8x16xf32>
    %43 = arith.cmpf oge, %41, %42 : vector<8x16xf32>
    %cst_20 = arith.constant 0.00999999977 : f32
    %44 = vector.broadcast %cst_20 : f32 to vector<8x16xf32>
    %45 = arith.mulf %44, %41 : vector<8x16xf32>
    %46 = arith.select %43, %41, %45 : vector<8x16xi1>, vector<8x16xf32>
    %cst_21 = arith.constant dense<0.000000e+00> : vector<16xf32>
    %47 = vector.multi_reduction <add>, %46, %cst_21 [0] : vector<8x16xf32> to vector<16xf32>
    %48 = vector.shape_cast %47 : vector<16xf32> to vector<1x16xf32>
    %cst_22 = arith.constant 8.000000e+00 : f32
    %49 = vector.broadcast %cst_22 : f32 to vector<1x16xf32>
    %50 = arith.divf %48, %49 : vector<1x16xf32>
    %51 = vector.broadcast %50 : vector<1x16xf32> to vector<8x16xf32>
    %52 = arith.subf %46, %51 : vector<8x16xf32>
    %53 = arith.mulf %52, %52 : vector<8x16xf32>
    %cst_23 = arith.constant dense<0.000000e+00> : vector<16xf32>
    %54 = vector.multi_reduction <add>, %53, %cst_23 [0] : vector<8x16xf32> to vector<16xf32>
    %55 = vector.shape_cast %54 : vector<16xf32> to vector<1x16xf32>
    %cst_24 = arith.constant 8.000000e+00 : f32
    %56 = vector.broadcast %cst_24 : f32 to vector<1x16xf32>
    %57 = arith.divf %55, %56 : vector<1x16xf32>
    %58 = vector.broadcast %50 : vector<1x16xf32> to vector<8x16xf32>
    %59 = arith.subf %46, %58 : vector<8x16xf32>
    %cst_25 = arith.constant 9.99999974E-6 : f32
    %60 = vector.broadcast %cst_25 : f32 to vector<1x16xf32>
    %61 = arith.addf %57, %60 : vector<1x16xf32>
    %62 = math.rsqrt %61 : vector<1x16xf32>
    %63 = vector.broadcast %62 : vector<1x16xf32> to vector<8x16xf32>
    %64 = arith.mulf %59, %63 : vector<8x16xf32>
    %65 = vector.broadcast %37 : vector<1x16xf32> to vector<8x16xf32>
    %66 = arith.mulf %64, %65 : vector<8x16xf32>
    %67 = vector.broadcast %38 : vector<1x16xf32> to vector<8x16xf32>
    %68 = arith.addf %66, %67 : vector<8x16xf32>
    %c16 = arith.constant 16 : index
    %c0_26 = arith.constant 0 : index
    %69 = vector.load %arg2[%c16, %c0_26] : memref<128x128xf32, #tpu.memory_space<vmem>>, vector<16x32xf32>
    %c2 = arith.constant 2 : index
    %c0_27 = arith.constant 0 : index
    %70 = vector.load %arg3[%c2, %c0_27] : memref<16x128xf32, #tpu.memory_space<vmem>>, vector<1x32xf32>
    %c7 = arith.constant 7 : index
    %c0_28 = arith.constant 0 : index
    %71 = vector.load %arg3[%c7, %c0_28] : memref<16x128xf32, #tpu.memory_space<vmem>>, vector<1x32xf32>
    %c12 = arith.constant 12 : index
    %c0_29 = arith.constant 0 : index
    %72 = vector.load %arg3[%c12, %c0_29] : memref<16x128xf32, #tpu.memory_space<vmem>>, vector<1x32xf32>
    %cst_30 = arith.constant dense<0.000000e+00> : vector<8x32xf32>
    %73 = tpu.matmul %68, %69, %cst_30 {dimension_numbers = #tpu.dot_dimension_numbers<[1], [0], [0], [1], [0, 0, 1, 1], [], []>} : vector<8x16xf32>, vector<16x32xf32>, vector<8x32xf32> -> vector<8x32xf32>
    %74 = vector.broadcast %70 : vector<1x32xf32> to vector<8x32xf32>
    %75 = arith.addf %73, %74 : vector<8x32xf32>
    %cst_31 = arith.constant 0.000000e+00 : f32
    %76 = vector.broadcast %cst_31 : f32 to vector<8x32xf32>
    %77 = arith.cmpf oge, %75, %76 : vector<8x32xf32>
    %cst_32 = arith.constant 0.00999999977 : f32
    %78 = vector.broadcast %cst_32 : f32 to vector<8x32xf32>
    %79 = arith.mulf %78, %75 : vector<8x32xf32>
    %80 = arith.select %77, %75, %79 : vector<8x32xi1>, vector<8x32xf32>
    %cst_33 = arith.constant dense<0.000000e+00> : vector<32xf32>
    %81 = vector.multi_reduction <add>, %80, %cst_33 [0] : vector<8x32xf32> to vector<32xf32>
    %82 = vector.shape_cast %81 : vector<32xf32> to vector<1x32xf32>
    %cst_34 = arith.constant 8.000000e+00 : f32
    %83 = vector.broadcast %cst_34 : f32 to vector<1x32xf32>
    %84 = arith.divf %82, %83 : vector<1x32xf32>
    %85 = vector.broadcast %84 : vector<1x32xf32> to vector<8x32xf32>
    %86 = arith.subf %80, %85 : vector<8x32xf32>
    %87 = arith.mulf %86, %86 : vector<8x32xf32>
    %cst_35 = arith.constant dense<0.000000e+00> : vector<32xf32>
    %88 = vector.multi_reduction <add>, %87, %cst_35 [0] : vector<8x32xf32> to vector<32xf32>
    %89 = vector.shape_cast %88 : vector<32xf32> to vector<1x32xf32>
    %cst_36 = arith.constant 8.000000e+00 : f32
    %90 = vector.broadcast %cst_36 : f32 to vector<1x32xf32>
    %91 = arith.divf %89, %90 : vector<1x32xf32>
    %92 = vector.broadcast %84 : vector<1x32xf32> to vector<8x32xf32>
    %93 = arith.subf %80, %92 : vector<8x32xf32>
    %cst_37 = arith.constant 9.99999974E-6 : f32
    %94 = vector.broadcast %cst_37 : f32 to vector<1x32xf32>
    %95 = arith.addf %91, %94 : vector<1x32xf32>
    %96 = math.rsqrt %95 : vector<1x32xf32>
    %97 = vector.broadcast %96 : vector<1x32xf32> to vector<8x32xf32>
    %98 = arith.mulf %93, %97 : vector<8x32xf32>
    %99 = vector.broadcast %71 : vector<1x32xf32> to vector<8x32xf32>
    %100 = arith.mulf %98, %99 : vector<8x32xf32>
    %101 = vector.broadcast %72 : vector<1x32xf32> to vector<8x32xf32>
    %102 = arith.addf %100, %101 : vector<8x32xf32>
    %c32 = arith.constant 32 : index
    %c0_38 = arith.constant 0 : index
    %103 = vector.load %arg2[%c32, %c0_38] : memref<128x128xf32, #tpu.memory_space<vmem>>, vector<32x64xf32>
    %c3 = arith.constant 3 : index
    %c0_39 = arith.constant 0 : index
    %104 = vector.load %arg3[%c3, %c0_39] : memref<16x128xf32, #tpu.memory_space<vmem>>, vector<1x64xf32>
    %c8_40 = arith.constant 8 : index
    %c0_41 = arith.constant 0 : index
    %105 = vector.load %arg3[%c8_40, %c0_41] : memref<16x128xf32, #tpu.memory_space<vmem>>, vector<1x64xf32>
    %c13 = arith.constant 13 : index
    %c0_42 = arith.constant 0 : index
    %106 = vector.load %arg3[%c13, %c0_42] : memref<16x128xf32, #tpu.memory_space<vmem>>, vector<1x64xf32>
    %cst_43 = arith.constant dense<0.000000e+00> : vector<8x64xf32>
    %107 = tpu.matmul %102, %103, %cst_43 {dimension_numbers = #tpu.dot_dimension_numbers<[1], [0], [0], [1], [0, 0, 1, 1], [], []>} : vector<8x32xf32>, vector<32x64xf32>, vector<8x64xf32> -> vector<8x64xf32>
    %108 = vector.broadcast %104 : vector<1x64xf32> to vector<8x64xf32>
    %109 = arith.addf %107, %108 : vector<8x64xf32>
    %cst_44 = arith.constant 0.000000e+00 : f32
    %110 = vector.broadcast %cst_44 : f32 to vector<8x64xf32>
    %111 = arith.cmpf oge, %109, %110 : vector<8x64xf32>
    %cst_45 = arith.constant 0.00999999977 : f32
    %112 = vector.broadcast %cst_45 : f32 to vector<8x64xf32>
    %113 = arith.mulf %112, %109 : vector<8x64xf32>
    %114 = arith.select %111, %109, %113 : vector<8x64xi1>, vector<8x64xf32>
    %cst_46 = arith.constant dense<0.000000e+00> : vector<64xf32>
    %115 = vector.multi_reduction <add>, %114, %cst_46 [0] : vector<8x64xf32> to vector<64xf32>
    %116 = vector.shape_cast %115 : vector<64xf32> to vector<1x64xf32>
    %cst_47 = arith.constant 8.000000e+00 : f32
    %117 = vector.broadcast %cst_47 : f32 to vector<1x64xf32>
    %118 = arith.divf %116, %117 : vector<1x64xf32>
    %119 = vector.broadcast %118 : vector<1x64xf32> to vector<8x64xf32>
    %120 = arith.subf %114, %119 : vector<8x64xf32>
    %121 = arith.mulf %120, %120 : vector<8x64xf32>
    %cst_48 = arith.constant dense<0.000000e+00> : vector<64xf32>
    %122 = vector.multi_reduction <add>, %121, %cst_48 [0] : vector<8x64xf32> to vector<64xf32>
    %123 = vector.shape_cast %122 : vector<64xf32> to vector<1x64xf32>
    %cst_49 = arith.constant 8.000000e+00 : f32
    %124 = vector.broadcast %cst_49 : f32 to vector<1x64xf32>
    %125 = arith.divf %123, %124 : vector<1x64xf32>
    %126 = vector.broadcast %118 : vector<1x64xf32> to vector<8x64xf32>
    %127 = arith.subf %114, %126 : vector<8x64xf32>
    %cst_50 = arith.constant 9.99999974E-6 : f32
    %128 = vector.broadcast %cst_50 : f32 to vector<1x64xf32>
    %129 = arith.addf %125, %128 : vector<1x64xf32>
    %130 = math.rsqrt %129 : vector<1x64xf32>
    %131 = vector.broadcast %130 : vector<1x64xf32> to vector<8x64xf32>
    %132 = arith.mulf %127, %131 : vector<8x64xf32>
    %133 = vector.broadcast %105 : vector<1x64xf32> to vector<8x64xf32>
    %134 = arith.mulf %132, %133 : vector<8x64xf32>
    %135 = vector.broadcast %106 : vector<1x64xf32> to vector<8x64xf32>
    %136 = arith.addf %134, %135 : vector<8x64xf32>
    %c64 = arith.constant 64 : index
    %c0_51 = arith.constant 0 : index
    %137 = vector.load %arg2[%c64, %c0_51] : memref<128x128xf32, #tpu.memory_space<vmem>>, vector<64x128xf32>
    %c4 = arith.constant 4 : index
    %c0_52 = arith.constant 0 : index
    %138 = vector.load %arg3[%c4, %c0_52] : memref<16x128xf32, #tpu.memory_space<vmem>>, vector<1x128xf32>
    %c9 = arith.constant 9 : index
    %c0_53 = arith.constant 0 : index
    %139 = vector.load %arg3[%c9, %c0_53] : memref<16x128xf32, #tpu.memory_space<vmem>>, vector<1x128xf32>
    %c14 = arith.constant 14 : index
    %c0_54 = arith.constant 0 : index
    %140 = vector.load %arg3[%c14, %c0_54] : memref<16x128xf32, #tpu.memory_space<vmem>>, vector<1x128xf32>
    %cst_55 = arith.constant dense<0.000000e+00> : vector<8x128xf32>
    %141 = tpu.matmul %136, %137, %cst_55 {dimension_numbers = #tpu.dot_dimension_numbers<[1], [0], [0], [1], [0, 0, 1, 1], [], []>} : vector<8x64xf32>, vector<64x128xf32>, vector<8x128xf32> -> vector<8x128xf32>
    %142 = vector.broadcast %138 : vector<1x128xf32> to vector<8x128xf32>
    %143 = arith.addf %141, %142 : vector<8x128xf32>
    %cst_56 = arith.constant 0.000000e+00 : f32
    %144 = vector.broadcast %cst_56 : f32 to vector<8x128xf32>
    %145 = arith.cmpf oge, %143, %144 : vector<8x128xf32>
    %cst_57 = arith.constant 0.00999999977 : f32
    %146 = vector.broadcast %cst_57 : f32 to vector<8x128xf32>
    %147 = arith.mulf %146, %143 : vector<8x128xf32>
    %148 = arith.select %145, %143, %147 : vector<8x128xi1>, vector<8x128xf32>
    %cst_58 = arith.constant dense<0.000000e+00> : vector<128xf32>
    %149 = vector.multi_reduction <add>, %148, %cst_58 [0] : vector<8x128xf32> to vector<128xf32>
    %150 = vector.shape_cast %149 : vector<128xf32> to vector<1x128xf32>
    %cst_59 = arith.constant 8.000000e+00 : f32
    %151 = vector.broadcast %cst_59 : f32 to vector<1x128xf32>
    %152 = arith.divf %150, %151 : vector<1x128xf32>
    %153 = vector.broadcast %152 : vector<1x128xf32> to vector<8x128xf32>
    %154 = arith.subf %148, %153 : vector<8x128xf32>
    %155 = arith.mulf %154, %154 : vector<8x128xf32>
    %cst_60 = arith.constant dense<0.000000e+00> : vector<128xf32>
    %156 = vector.multi_reduction <add>, %155, %cst_60 [0] : vector<8x128xf32> to vector<128xf32>
    %157 = vector.shape_cast %156 : vector<128xf32> to vector<1x128xf32>
    %cst_61 = arith.constant 8.000000e+00 : f32
    %158 = vector.broadcast %cst_61 : f32 to vector<1x128xf32>
    %159 = arith.divf %157, %158 : vector<1x128xf32>
    %160 = vector.broadcast %152 : vector<1x128xf32> to vector<8x128xf32>
    %161 = arith.subf %148, %160 : vector<8x128xf32>
    %cst_62 = arith.constant 9.99999974E-6 : f32
    %162 = vector.broadcast %cst_62 : f32 to vector<1x128xf32>
    %163 = arith.addf %159, %162 : vector<1x128xf32>
    %164 = math.rsqrt %163 : vector<1x128xf32>
    %165 = vector.broadcast %164 : vector<1x128xf32> to vector<8x128xf32>
    %166 = arith.mulf %161, %165 : vector<8x128xf32>
    %167 = vector.broadcast %139 : vector<1x128xf32> to vector<8x128xf32>
    %168 = arith.mulf %166, %167 : vector<8x128xf32>
    %169 = vector.broadcast %140 : vector<1x128xf32> to vector<8x128xf32>
    %170 = arith.addf %168, %169 : vector<8x128xf32>
    %171 = arith.truncf %170 : vector<8x128xf32> to vector<8x128xbf16>
    %c0_63 = arith.constant 0 : index
    %c0_64 = arith.constant 0 : index
    %172 = vector.load %arg4[%c0_63, %c0_64] : memref<128x2560xbf16, #tpu.memory_space<vmem>>, vector<128x2560xbf16>
    %cst_65 = arith.constant dense<0.000000e+00> : vector<8x2560xf32>
    %173 = tpu.matmul %171, %172, %cst_65 {dimension_numbers = #tpu.dot_dimension_numbers<[1], [0], [0], [1], [0, 0, 1, 1], [], []>} : vector<8x128xbf16>, vector<128x2560xbf16>, vector<8x2560xf32> -> vector<8x2560xf32>
    %c0_66 = arith.constant 0 : index
    %c0_67 = arith.constant 0 : index
    %174 = vector.load %arg5[%c0_66, %c0_67] : memref<1x2560xf32, #tpu.memory_space<vmem>>, vector<1x2560xf32>
    %175 = vector.broadcast %174 : vector<1x2560xf32> to vector<8x2560xf32>
    %176 = arith.addf %173, %175 : vector<8x2560xf32>
    %cst_68 = arith.constant 0.000000e+00 : f32
    %177 = vector.broadcast %cst_68 : f32 to vector<8x2560xf32>
    %178 = arith.maximumf %176, %177 : vector<8x2560xf32>
    %c0_69 = arith.constant 0 : index
    %c0_70 = arith.constant 0 : index
    %179 = vector.load %arg6[%c0_69, %c0_70] : memref<8x2560xf32, #tpu.memory_space<vmem>>, vector<8x2560xf32>
    tpu.vector_store %arg6[%c0_69, %c0_70], %178 {strides = array<i32>} : memref<8x2560xf32, #tpu.memory_space<vmem>>, vector<8x2560xf32>,
    return
  }
  func.func @transform_0(%arg0: i32) -> (i32, i32) {
    %c0_i32 = arith.constant 0 : i32
    %c0_i32_0 = arith.constant 0 : i32
    %c0_i32_1 = arith.constant 0 : i32
    return %c0_i32, %c0_i32_0 : i32, i32
  }
  func.func @transform_1(%arg0: i32) -> (i32, i32) {
    %c0_i32 = arith.constant 0 : i32
    %c0_i32_0 = arith.constant 0 : i32
    %c0_i32_1 = arith.constant 0 : i32
    return %c0_i32, %c0_i32_0 : i32, i32
  }
  func.func @transform_2(%arg0: i32) -> (i32, i32) {
    %c0_i32 = arith.constant 0 : i32
    %c0_i32_0 = arith.constant 0 : i32
    %c0_i32_1 = arith.constant 0 : i32
    return %c0_i32, %c0_i32_0 : i32, i32
  }
  func.func @transform_3(%arg0: i32) -> (i32, i32) {
    %c0_i32 = arith.constant 0 : i32
    %c0_i32_0 = arith.constant 0 : i32
    return %c0_i32, %arg0 : i32, i32
  }
  func.func @transform_4(%arg0: i32) -> (i32, i32) {
    %c0_i32 = arith.constant 0 : i32
    %c0_i32_0 = arith.constant 0 : i32
    return %c0_i32, %arg0 : i32, i32
  }
  func.func @transform_5(%arg0: i32) -> (i32, i32) {
    %c0_i32 = arith.constant 0 : i32
    %c0_i32_0 = arith.constant 0 : i32
    return %c0_i32, %arg0 : i32, i32
  }
}

</mosaic_0001>

<bundles_post_ra>
// kernel: neuronet_forward.1
= control target key start
LH: loop header
LB: loop body
LE: loop exit
PB: predicated region body
PF: predicated region fallthrough
CT: control target
= control target key end

     0   :  { %s3913_s0 = inlined_call_operand.vmem [shape: f32[8,2], index: 0, kind: input, shape index: {}]   ;;  %s3914_s1 = inlined_call_operand.hbm [shape: f32[128,128], index: 1, kind: input, shape index: {}]   ;;  %s3915_s2 = inlined_call_operand.hbm [shape: f32[16,128], index: 2, kind: input, shape index: {}]   ;;  %s3916_s3 = inlined_call_operand.hbm [shape: bf16[128,10240], index: 3, kind: input, shape index: {}]   ;;  %s3917_s4 = inlined_call_operand.hbm [shape: f32[1,10240], index: 4, kind: input, shape index: {}]   ;;  %s3918_s5 = inlined_call_operand.hbm [shape: f32[8,10000], index: 5, kind: output, shape index: {}]  }
   0x1   :  { %3926 = sst [smem:[#allocation18_spill]] %s3914_s1 }
   0x2   :  { %3927 = sst [smem:[#allocation19_spill]] %s3916_s3 }
   0x3   :  { %10 = vsyncpa [#allocation3], 0 }
   0x4   :  { %11 = vsyncpa [#allocation6], 0 }
   0x5   :  { %12 = vsyncpa [#allocation4], 0 }
   0x6   :  { %14 = vsyncpa [#allocation4 + $0x1], 0  ;;  %s3289_s18 = smov 0   ;;  %s3291_s19 = smov 0  }
   0x7   :  { %s3293_s20 = smov 0   ;;  %s3295_s21 = smov 0  }
   0x8 LB: > { %3928 = sst [smem:[#allocation14_spill]] %s3236_s18  ;;  %s3310_s22 = sadd.s32 4294967295, %s3248_s21   ;;  %s3248_s21 = sphi %s3295_s21, %s3950_s21   ;;  %s3244_s20 = sphi %s3293_s20, %s3954_s20   ;;  %s3240_s19 = sphi %s3291_s19, %s3953_s19   ;;  %s3236_s18 = sphi %s3289_s18, %s3952_s18  }
   0x9   : > { %s2110_s23 = sadd.s32 4294967294, %s3248_s21   ;;  %s3314_s24 = sadd.s32 1, %s3248_s21  }
   0xa   : > { %3929 = sst [smem:[#allocation15_spill]] %s3314_s24  ;;  %s90_s25 = sadd.s32 1, %s3244_s20 }
   0xb   : > { %s87_s26 = ssub.s32 %s3248_s21, %s3314_s24  ;;  %p97_p0 = scmp.ne.s32.totalorder %s3244_s20, %s3240_s19 }
   0xc   : > { %p88_p1 = scmp.eq.s32.totalorder %s87_s26, 0  ;;  %p98_p2 = scmp.eq.s32.totalorder %s3248_s21, 0 }
   0xd   : > { %p103_p3 = scmp.ne.s32.totalorder %s3240_s19, %s3236_s18  ;;  %p3922_p4 = scmp.eq.s32.totalorder %s3310_s22, 0 }
   0xe   : > { %s3326_s27 = scalar_select %p88_p1, %s3244_s20, %s90_s25  }
   0xf   : > { %p3328_p5 = por %p98_p2, %p97_p0  ;;  %p3334_p6 = por %p3922_p4, %p103_p3 }
  0x10   : > { %3930 = sst [smem:[#allocation16_spill]] %s3326_s27  ;;  %p153_p7 = scmp.eq.s32.totalorder %s3310_s22, 3 }
  0x11   : > { %p159_p8 = scmp.eq.s32.totalorder %s2110_s23, 3  ;;  %p2111_p9 = scmp.ge.s32.totalorder %s3248_s21, 1 }
  0x12   : > { %p166_p10 = scmp.lt.s32.totalorder %s3248_s21, 5  ;;  %p3341_p11 = por %p153_p7, %p97_p0 }
  0x13   : > { %p3345_p12 = por %p159_p8, %p103_p3  ;;  %s3937_s1 = sld [smem:[#allocation18_spill]] }
  0x14   : > { %p3349_p13 = pnand %p2111_p9, %p166_p10  ;;  %s3250_s11 = smov [#allocation2]  }
  0x15   : > { %s3934_s6 = scalar_select %p3345_p12, 1, 0 }
  0x16   : > { %p2952_p0 = pneg %p3349_p13  ;;  %s182_s12 = sshll.u32 %s3250_s11, 4  ;;  %s183_s12 = int_to_ptr.vmem [resolvable:$true] %s182_s12 }
  0x17   : > { %3935 = sst [smem:[#allocation17_spill]] %s3934_s6  ;;  %p2972_p2 = scmp.lt.s32.totalorder %s3248_s21, 4 }
  0x18   : > { %p3360_p1 = pnand %p2952_p0, %p3922_p4  ;;  %s3921_s14 = smov 128  }
  0x19   : > { %s180_s10 = sshll.u32 %s3937_s1, 4  ;;  %s3923_s15 = smov 8   ;;  %s181_s10 = int_to_ptr.hbm [resolvable:$true] %s180_s10 }
  0x1a   : > { %2955 = dma.hbm_to_vmem [thread:$0]  (!%p3360_p1), %s181_s10, 2048, %s183_s12, [#allocation3], %s3921_s14, %s3921_s14, %s3923_s15  }
  0x1b   : > { %p3372_p3 = pnand %p2972_p2, %p3328_p5  ;;  %s210_s17 = sand.u32 1, %s3248_s21  }
  0x1c   : > { %s212_s23 = sand.u32 1, %s3244_s20   ;;  %s2772_s26 = smul.u32 80, %s3248_s21 }
  0x1d   : > { %s2934_s25 = smul.u32 1280, %s212_s23  ;;  %s3940_s3 = sld [smem:[#allocation19_spill]] }
  0x1e   : > { %s3384_s28 = scalar_lea.sflag [#allocation3], %s210_s17  ;;  %p3077_p7 = pneg %p3372_p3 }
  0x1f   : > { %s214_s1 = scalar_lea.vmem [#allocation7], %s2934_s25 }
  0x20   : > { %s222_s27 = sshll.u32 %s214_s1, 4  ;;  %s223_s27 = int_to_ptr.vmem [resolvable:$true] %s222_s27 }
  0x23   : > { %s219_s11 = scalar_lea.hbm %s3940_s3, %s2772_s26  ;;  %s3080_s25 = scalar_lea.hbm %s3940_s3, 5120 }
  0x24   : > { %s220_s24 = sshll.u32 %s219_s11, 4  ;;  %s221_s24 = int_to_ptr.hbm [resolvable:$true] %s220_s24 }
  0x25   : > { %s3073_s10 = sshra.s32 %s221_s24, 4  ;;  %s3074_s10 = int_to_ptr.hbm [resolvable:$true] %s3073_s10 }
  0x26   : > { %s3075_s12 = scalar_lea.hbm %s3074_s10, 1280  ;;  %p3081_p10 = scmp.lt.s32.totalorder %s3074_s10, %s3940_s3 }
  0x27   : > { %p3076_p5 = scmp.ne.s32.totalorder %s3074_s10, %s3075_s12  ;;  %p3082_p0 = scmp.lt.s32.totalorder %s3080_s25, %s3075_s12 }
  0x29   : > { %p3078_p8 = pnand %p3077_p7, %p3076_p5  ;;  %p3083_p2 = por %p3082_p0, %p3081_p10 }
  0x2b   : > { %p3079_p9 = pneg %p3078_p8 }
  0x2d   : > { %p3084_p4 = pnand %p3083_p2, %p3079_p9 }
  0x2f   : > { %3087 = shalt.err (!%p3084_p4)
}
  0x30   : > { %s3253_s17 = smov 5120   ;;  %s3254_s9 = smov 1280  }
  0x31   : > { %s3255_s11 = smov 80   ;;  %s194_s15 = sshll.u32 %s3915_s2, 4  ;;  %s195_s15 = int_to_ptr.hbm [resolvable:$true] %s194_s15 }
  0x32   : > { %2962 = dma.hbm_to_vmem [thread:$0]  (!%p3372_p3), %s221_s24, 20480, %s223_s27, %s3384_s28, %s3253_s17, %s3254_s9, %s3255_s11  }
  0x33   : > { %s3256_s10 = smov [#allocation5]   ;;  %s2935_s25 = smul.u32 20, %s212_s23 }
  0x34   : > { %s196_s12 = sshll.u32 %s3256_s10, 4  ;;  %s3941_s1 = smov 8   ;;  %s197_s12 = int_to_ptr.vmem [resolvable:$true] %s196_s12 }
  0x35   : > { %s3942_s26 = smov 128   ;;  %s237_s3 = smul.u32 20, %s3248_s21 }
  0x36   : > { %2958 = dma.hbm_to_vmem [thread:$0]  (!%p3360_p1), %s195_s15, 256, %s197_s12, [#allocation6], %s3942_s26, %s3942_s26, %s3941_s1  }
  0x37   : > { %s236_s6 = scalar_lea.vmem [#allocation8], %s2935_s25  ;;  %s240_s17 = scalar_lea.hbm %s3917_s4, %s237_s3 }
  0x38   : > { %s244_s18 = sshll.u32 %s236_s6, 4  ;;  %s242_s9 = sshll.u32 %s240_s17, 4  ;;  %s245_s18 = int_to_ptr.vmem [resolvable:$true] %s244_s18  ;;  %s243_s9 = int_to_ptr.hbm [resolvable:$true] %s242_s9 }
  0x39   : > { %s3133_s11 = sshra.s32 %s243_s9, 4  ;;  %s3140_s23 = scalar_lea.hbm %s3917_s4, 80  ;;  %s3134_s11 = int_to_ptr.hbm [resolvable:$true] %s3133_s11 }
  0x3a   : > { %s3135_s14 = scalar_lea.hbm %s3134_s11, 20  ;;  %p3141_p1 = scmp.lt.s32.totalorder %s3134_s11, %s3917_s4 }
  0x3b   : > { %p3136_p4 = scmp.ne.s32.totalorder %s3134_s11, %s3135_s14  ;;  %p3142_p9 = scmp.lt.s32.totalorder %s3140_s23, %s3135_s14 }
  0x3d   : > { %p3138_p5 = pnand %p3136_p4, %p3077_p7  ;;  %p3143_p10 = por %p3142_p9, %p3141_p1 }
  0x3f   : > { %p3139_p8 = pneg %p3138_p5 }
  0x41   : > { %p3144_p0 = pnand %p3143_p10, %p3139_p8 }
  0x43   : > { %3147 = shalt.err (!%p3144_p0)
}
  0x44   : > { %2965 = dma.hbm_to_vmem [thread:$0]  (!%p3372_p3), %s243_s9, 320, %s245_s18, %s3384_s28  }
  0x45   : > { %253 = sbr.rel (%p3349_p13) target bundleno = 1321 (0x529), region = 40  ;;  %p3943_p7 = scmp.eq.s32.totalorder (!%p3349_p13), %s3310_s22, 0 }
  0x4a   : > { %3219 = dma.done.wait (%p3943_p7), [#allocation3], 2048   ;;  %p3944_p2 = pmov %p3943_p7 }
  0x4c   : > { %3221 = vsyncadd (%p3944_p2), [#allocation3], 4294965248  ;;  %p3945_p4 = pmov %p3944_p2 }
  0x4d   : > { %p3946_p5 = pmov %p3944_p2 }
  0x4e   : > { %3223 = dma.done.wait (%p3945_p4), [#allocation6], 256  }
  0x4f   : > { %3225 = vsyncadd (%p3946_p5), [#allocation6], 4294967040  ;;  %s265_s3 = sand.u32 1, %s3310_s22   ;;  %s3438_s18 = sand.u32 1, %s3240_s19  }
  0x50   : > { %s2936_s7 = smul.u32 1280, %s3438_s18  ;;  %s266_s16 = scalar_lea.sflag [#allocation3], %s265_s3 }
  0x52   : > { %s3441_s28 = scalar_lea.vmem [#allocation7], %s2936_s7 }
  0x53   : > { %3227 = dma.done.wait (%p3334_p6), %s266_s16, 20800  }
  0x54   : > { %3229 = vsyncadd (%p3334_p6), %s266_s16, 4294946496  ;;  %vm329_vm0 = vcmask 1041408   ;;  %vm325_vm1 = vcmask 15360   ;;  %v320_v0 = vld [vmem:[#allocation2] sm:$0x3]  ;;  %v398_v2 = vld [vmem:[#allocation2 + $0x8] sm:$0xff] }
  0x55   : > { %v319_v1 = vld [vmem:[%s3913_s0] sm:$0xff]  ;;  %2119 = vmatpush.msk.msra.mxu1 %vm329_vm0, %v320_v0  ;;  %v3257_v3 = vmov 8.0   ;;  %vm356_vm3 = vcmask 64512   ;;  %v3018_v43 = vld [vmem:[#allocation5 + $0xa] ss:$0 sm:$0xff]  ;;  %v465_v46 = vld [vmem:[#allocation2 + $0x18] sm:$0xff] }
  0x56   : > { %2120 = vmatmul.msk.f32.vlgmr.msra.gmra.mxu1 %vm325_vm1, %v319_v1  ;;  %3031 = vrcp.f32 %v3257_v3  ;;  %v3016_v5 = vld [vmem:[#allocation5] ss:$0 sm:$0xff]  ;;  %v3017_v40 = vld [vmem:[#allocation5 + $0x5] ss:$0 sm:$0xff]  ;;  %v464_v47 = vld [vmem:[#allocation2 + $0x10] sm:$0xff]  ;;  %487 = vmatpush.msra.mxu2 %v465_v46  ;;  %vm429_vm9 = vcmask 130048  }
  0x57   : > { %421 = vmatpush.msrb.mxu1 %v398_v2  ;;  %v3019_v48 = vld [vmem:[#allocation5 + $0x1] ss:$0 sm:$0xff]  ;;  %vm496_vm14 = vcmask 261120   ;;  %s2937_s29 = smul.u32 20, %s3438_s18  ;;  %s1978_s24 = scalar_lea.sflag [#allocation4], %s3438_s18 }
  0x58   : > { %488 = vmatpush.msra.mxu2 %v464_v47  ;;  %s2938_s1 = smul.u32 160, %s3438_s18 }
  0x59   : > { %s3827_s25 = scalar_lea.vmem [#allocation8], %s2937_s29  ;;  %s1985_s27 = smul.u32 (%p3341_p11), 20, %s3310_s22 }
  0x5a   : > { %s3831_s26 = scalar_lea.vmem [#allocation9], %s2938_s1 }
  0x5b   : > { %s1986_s17 = ssub.s32 (%p3341_p11), 79, %s1985_s27 }
  0x5c   : > { %v3032_v4 = vpop.eup %3031  ;;  %p1987_p6 = scmp.lt.s32.totalorder (%p3341_p11), %s1986_s17, 20 }
  0x5d   : > { %v365_v7 = vmul.f32 8.0, %v3032_v4  ;;  %vm369_vm4 = vweird.f32 %v3032_v4 }
  0x5f   : > { %v366_v10 = vsub.f32 1.0, %v365_v7 }
  0x61   : > { %v367_v14 = vmul.f32 %v3032_v4, %v366_v10 }
  0x63   : > { %v368_v17 = vadd.f32 %v3032_v4, %v367_v14  ;;  %v3020_v14 = vld [vmem:[#allocation5 + $0x6] ss:$0 sm:$0xff] }
  0x65   : > { %v3451_v20 = vsel %vm369_vm4, %v3032_v4, %v368_v17  ;;  %v3021_v17 = vld [vmem:[#allocation5 + $0xb] ss:$0 sm:$0xff] }
  0xd3   : > { %v350_v6 = vpop.f32.mrf.mxu1 }
  0xd4   : > { %v351_v8 = vadd.f32 %v3016_v5, %v350_v6 }
  0xd6   : > { %vm353_vm2 = vcmp.ge.f32.partialorder %v351_v8, 0.0  ;;  %v354_v9 = vmul.f32 0.01, %v351_v8 }
  0xd8   : > { %v355_v11 = vsel %vm353_vm2, %v351_v8, %v354_v9 }
  0xd9   : > { %v357_v12 = vsel %vm356_vm3, %v355_v11, 0.0 }
  0xda   : > { %v358_v13 = vrot.slane %v357_v12, 4 }
  0xdc   : > { %v359_v15 = vadd.f32 %v358_v13, %v357_v12 }
  0xde   : > { %v360_v16 = vrot.slane %v359_v15, 2 }
  0xe0   : > { %v361_v18 = vadd.f32 %v360_v16, %v359_v15 }
  0xe2   : > { %v362_v19 = vrot.slane %v361_v18, 1 }
  0xe4   : > { %v363_v21 = vadd.f32 %v362_v19, %v361_v18 }
  0xe6   : > { %v371_v22 = vmul.f32 %v3451_v20, %v363_v21  ;;  %v534_v21 = vld [vmem:[#allocation2 + $0x38] sm:$0xff] }
  0xe7   : > { %554 = vmatpush.msra.mxu3 %v534_v21 }
  0xe8   : > { %v372_v23 = vsub.f32 %v355_v11, %v371_v22  ;;  %v533_v22 = vld [vmem:[#allocation2 + $0x30] sm:$0xff] }
  0xe9   : > { %555 = vmatpush.msra.mxu3 %v533_v22 }
  0xea   : > { %v373_v24 = vmul.f32 %v372_v23, %v372_v23 }
  0xec   : > { %v374_v25 = vsel %vm356_vm3, %v373_v24, 0.0  ;;  %v531_v24 = vld [vmem:[#allocation2 + $0x20] sm:$0xff] }
  0xed   : > { %v375_v26 = vrot.slane %v374_v25, 4 }
  0xef   : > { %v376_v27 = vadd.f32 %v375_v26, %v374_v25  ;;  %v3022_v25 = vld [vmem:[#allocation5 + $0x2] ss:$0 sm:$0xff] }
  0xf1   : > { %v377_v28 = vrot.slane %v376_v27, 2 }
  0xf3   : > { %v378_v29 = vadd.f32 %v377_v28, %v376_v27 }
  0xf5   : > { %v379_v30 = vrot.slane %v378_v29, 1 }
  0xf7   : > { %v380_v31 = vadd.f32 %v379_v30, %v378_v29 }
  0xf9   : > { %v381_v32 = vmul.f32 %v380_v31, %v3451_v20 }
  0xfb   : > { %v382_v33 = vadd.f32 1e-05, %v381_v32 }
  0xfd   : > { %3033 = vrsqrt.f32 %v382_v33  ;;  %vm389_vm6 = vweird.f32 %v382_v33 }
 0x103   : > { %v3034_v34 = vpop.eup %3033 }
 0x104   : > { %v384_v35 = vmul.f32 %v3034_v34, %v382_v33  ;;  %vm390_vm5 = vweird.f32 %v3034_v34 }
 0x105   : > { %vm391_vm7 = vmor %vm389_vm6, %vm390_vm5 }
 0x106   : > { %v385_v36 = vmul.f32 %v3034_v34, %v384_v35 }
 0x108   : > { %v386_v37 = vmul.f32 0.5, %v385_v36 }
 0x10a   : > { %v387_v38 = vsub.f32 1.5, %v386_v37 }
 0x10c   : > { %v388_v39 = vmul.f32 %v3034_v34, %v387_v38 }
 0x10e   : > { %v392_v41 = vsel %vm391_vm7, %v3034_v34, %v388_v39 }
 0x10f   : > { %v393_v42 = vmul.f32 %v392_v41, %v372_v23  ;;  %v532_v23 = vld [vmem:[#allocation2 + $0x28] sm:$0xff] }
 0x110   : > { %556 = vmatpush.msra.mxu3 %v532_v23 }
 0x111   : > { %v395_v44 = vmul.f32 %v3017_v40, %v393_v42 }
 0x112   : > { %557 = vmatpush.msra.mxu3 %v531_v24 }
 0x113   : > { %v397_v45 = vadd.f32 %v3018_v43, %v395_v44 }
 0x115   : > { %2121 = vmatmul.msk.f32.vlgmr.msrb.gmra.mxu1 %vm356_vm3, %v397_v45  ;;  %vm565_vm3 = vcmask 523264  }
 0x192   : > { %v423_v49 = vpop.f32.mrf.mxu1 }
 0x193   : > { %v424_v50 = vadd.f32 %v3019_v48, %v423_v49 }
 0x195   : > { %vm426_vm8 = vcmp.ge.f32.partialorder %v424_v50, 0.0  ;;  %v427_v51 = vmul.f32 0.01, %v424_v50 }
 0x197   : > { %v428_v52 = vsel %vm426_vm8, %v424_v50, %v427_v51 }
 0x198   : > { %v430_v53 = vsel %vm429_vm9, %v428_v52, 0.0 }
 0x199   : > { %v431_v54 = vrot.slane %v430_v53, 4 }
 0x19b   : > { %v432_v55 = vadd.f32 %v431_v54, %v430_v53 }
 0x19d   : > { %v433_v56 = vrot.slane %v432_v55, 2 }
 0x19f   : > { %v434_v57 = vadd.f32 %v433_v56, %v432_v55  ;;  %v3023_v55 = vld [vmem:[#allocation5 + $0x7] ss:$0 sm:$0xff] }
 0x1a1   : > { %v435_v58 = vrot.slane %v434_v57, 1 }
 0x1a3   : > { %v436_v59 = vadd.f32 %v435_v58, %v434_v57  ;;  %v3024_v58 = vld [vmem:[#allocation5 + $0xc] ss:$0 sm:$0xff] }
 0x1a5   : > { %v437_v60 = vmul.f32 %v436_v59, %v3451_v20 }
 0x1a7   : > { %v438_v61 = vsub.f32 %v428_v52, %v437_v60 }
 0x1a9   : > { %v439_v62 = vmul.f32 %v438_v61, %v438_v61 }
 0x1ab   : > { %v440_v63 = vsel %vm429_vm9, %v439_v62, 0.0  ;;  %v606_v62 = vld [vmem:[#allocation2 + $0x70] sm:$0xff] }
 0x1ac   : > { %v441_v0 = vrot.slane %v440_v63, 4 }
 0x1ae   : > { %v442_v1 = vadd.f32 %v441_v0, %v440_v63  ;;  %v605_v63 = vld [vmem:[#allocation2 + $0x68] sm:$0xff]  ;;  %v604_v0 = vld [vmem:[#allocation2 + $0x60] sm:$0xff] }
 0x1b0   : > { %v443_v2 = vrot.slane %v442_v1, 2 }
 0x1b2   : > { %v444_v3 = vadd.f32 %v443_v2, %v442_v1  ;;  %v603_v1 = vld [vmem:[#allocation2 + $0x58] sm:$0xff]  ;;  %v602_v2 = vld [vmem:[#allocation2 + $0x50] sm:$0xff] }
 0x1b4   : > { %v445_v4 = vrot.slane %v444_v3, 1 }
 0x1b6   : > { %v446_v5 = vadd.f32 %v445_v4, %v444_v3  ;;  %v601_v3 = vld [vmem:[#allocation2 + $0x48] sm:$0xff]  ;;  %v600_v4 = vld [vmem:[#allocation2 + $0x40] sm:$0xff] }
 0x1b8   : > { %v447_v6 = vmul.f32 %v446_v5, %v3451_v20  ;;  %v3025_v5 = vld [vmem:[#allocation5 + $0x3] ss:$0 sm:$0xff] }
 0x1ba   : > { %v448_v7 = vadd.f32 1e-05, %v447_v6 }
 0x1bc   : > { %3035 = vrsqrt.f32 %v448_v7  ;;  %vm455_vm11 = vweird.f32 %v448_v7 }
 0x1c2   : > { %v3036_v8 = vpop.eup %3035 }
 0x1c3   : > { %v450_v9 = vmul.f32 %v3036_v8, %v448_v7  ;;  %vm456_vm10 = vweird.f32 %v3036_v8 }
 0x1c4   : > { %vm457_vm12 = vmor %vm455_vm11, %vm456_vm10 }
 0x1c5   : > { %v451_v10 = vmul.f32 %v3036_v8, %v450_v9 }
 0x1c7   : > { %v452_v11 = vmul.f32 0.5, %v451_v10 }
 0x1c9   : > { %v453_v12 = vsub.f32 1.5, %v452_v11 }
 0x1cb   : > { %v454_v13 = vmul.f32 %v3036_v8, %v453_v12 }
 0x1cd   : > { %v458_v15 = vsel %vm457_vm12, %v3036_v8, %v454_v13 }
 0x1ce   : > { %v459_v16 = vmul.f32 %v458_v15, %v438_v61  ;;  %v607_v61 = vld [vmem:[#allocation2 + $0x78] sm:$0xff] }
 0x1cf   : > { %623 = vmatpush.msra.mxu0 %v607_v61 }
 0x1d0   : > { %v461_v18 = vmul.f32 %v3020_v14, %v459_v16 }
 0x1d1   : > { %624 = vmatpush.msra.mxu0 %v606_v62 }
 0x1d2   : > { %v463_v19 = vadd.f32 %v3021_v17, %v461_v18 }
 0x1d3   : > { %625 = vmatpush.msra.mxu0 %v605_v63  ;;  %v2894_v63 = vld [vmem:[%s3441_s28 + $0x3cc] sm:$0xf] }
 0x1d4   : > { %2122 = vmatmul.msk.f32.vlgmr.msra.gmra.mxu2 %vm429_vm9, %v463_v19 }
 0x1d5   : > { %626 = vmatpush.msra.mxu0 %v604_v0  ;;  %v2617_v0 = vld [vmem:[%s3441_s28 + $0x418] sm:$0xf0] }
 0x1d7   : > { %627 = vmatpush.msra.mxu0 %v603_v1  ;;  %v2620_v1 = vor.u32 %v2894_v63, %v2617_v0 }
 0x1d9   : > { %628 = vmatpush.msra.mxu0 %v602_v2  ;;  %v2527_v2 = vld [vmem:[%s3441_s28 + $0x320] sm:$0xf] }
 0x1db   : > { %629 = vmatpush.msra.mxu0 %v601_v3  ;;  %v2883_v3 = vld [vmem:[%s3441_s28 + $0x36c] sm:$0xf0] }
 0x1dd   : > { %630 = vmatpush.msra.mxu0 %v600_v4  ;;  %v2873_v4 = vld [vmem:[%s3441_s28 + $0x324] sm:$0xf] }
 0x257   : > { %v490_v26 = vpop.f32.mrf.mxu2 }
 0x258   : > { %v491_v27 = vadd.f32 %v3022_v25, %v490_v26 }
 0x25a   : > { %vm493_vm13 = vcmp.ge.f32.partialorder %v491_v27, 0.0  ;;  %v494_v28 = vmul.f32 0.01, %v491_v27 }
 0x25c   : > { %v495_v29 = vsel %vm493_vm13, %v491_v27, %v494_v28 }
 0x25d   : > { %v497_v30 = vsel %vm496_vm14, %v495_v29, 0.0 }
 0x25e   : > { %v498_v31 = vrot.slane %v497_v30, 4 }
 0x260   : > { %v499_v32 = vadd.f32 %v498_v31, %v497_v30 }
 0x262   : > { %v500_v33 = vrot.slane %v499_v32, 2 }
 0x264   : > { %v501_v34 = vadd.f32 %v500_v33, %v499_v32 }
 0x266   : > { %v502_v35 = vrot.slane %v501_v34, 1 }
 0x268   : > { %v503_v36 = vadd.f32 %v502_v35, %v501_v34 }
 0x26a   : > { %v504_v37 = vmul.f32 %v503_v36, %v3451_v20  ;;  %v3026_v36 = vld [vmem:[#allocation5 + $0x8] ss:$0 sm:$0xff] }
 0x26c   : > { %v505_v38 = vsub.f32 %v495_v29, %v504_v37 }
 0x26e   : > { %v506_v39 = vmul.f32 %v505_v38, %v505_v38 }
 0x270   : > { %v507_v40 = vsel %vm496_vm14, %v506_v39, 0.0  ;;  %v3027_v39 = vld [vmem:[#allocation5 + $0xd] ss:$0 sm:$0xff] }
 0x271   : > { %v508_v41 = vrot.slane %v507_v40, 4 }
 0x273   : > { %v509_v42 = vadd.f32 %v508_v41, %v507_v40 }
 0x275   : > { %v510_v43 = vrot.slane %v509_v42, 2 }
 0x277   : > { %v511_v44 = vadd.f32 %v510_v43, %v509_v42  ;;  %v2687_v42 = vld [vmem:[%s3441_s28 + $0x460] sm:$0xf]  ;;  %v2923_v43 = vld [vmem:[%s3441_s28 + $0x4ac] sm:$0xf0] }
 0x279   : > { %v512_v45 = vrot.slane %v511_v44, 1 }
 0x27b   : > { %v513_v46 = vadd.f32 %v512_v45, %v511_v44  ;;  %v2913_v44 = vld [vmem:[%s3441_s28 + $0x464] sm:$0xf]  ;;  %v2688_v45 = vor.u32 %v2923_v43, %v2687_v42  ;;  %v2289_v43 = vld [vmem:[%s3441_s28 + $0x190] sm:$0xf0] }
 0x27d   : > { %v514_v47 = vmul.f32 %v513_v46, %v3451_v20  ;;  %v2689_v46 = vld [vmem:[%s3441_s28 + $0x4b0] sm:$0xf0]  ;;  %1677 = vmatpush.bf16.msra.mxu1 %v2688_v45  ;;  %v2824_v45 = vld [vmem:[%s3441_s28 + $0x194] sm:$0xf0] }
 0x27f   : > { %v515_v48 = vadd.f32 1e-05, %v514_v47  ;;  %v2695_v47 = vld [vmem:[%s3441_s28 + $0x468] sm:$0xf] }
 0x281   : > { %3037 = vrsqrt.f32 %v515_v48  ;;  %vm522_vm0 = vweird.f32 %v515_v48 }
 0x287   : > { %v3038_v49 = vpop.eup %3037 }
 0x288   : > { %v517_v50 = vmul.f32 %v3038_v49, %v515_v48  ;;  %vm523_vm15 = vweird.f32 %v3038_v49  ;;  %v2924_v48 = vld [vmem:[%s3441_s28 + $0x4b4] sm:$0xf0] }
 0x289   : > { %vm524_vm1 = vmor %vm522_vm0, %vm523_vm15 }
 0x28a   : > { %v518_v51 = vmul.f32 %v3038_v49, %v517_v50  ;;  %v2696_v50 = vor.u32 %v2924_v48, %v2695_v47  ;;  %v2814_v48 = vld [vmem:[%s3441_s28 + $0x14c] sm:$0xf] }
 0x28c   : > { %v519_v52 = vmul.f32 0.5, %v518_v51  ;;  %v2914_v51 = vld [vmem:[%s3441_s28 + $0x46c] sm:$0xf]  ;;  %1703 = vmatpush.bf16.msrb.mxu3 %v2696_v50  ;;  %v3028_v50 = vld [vmem:[#allocation5 + $0x4] ss:$0 sm:$0xff] }
 0x28e   : > { %v520_v53 = vsub.f32 1.5, %v519_v52  ;;  %v2697_v52 = vld [vmem:[%s3441_s28 + $0x4b8] sm:$0xf0] }
 0x290   : > { %v521_v54 = vmul.f32 %v3038_v49, %v520_v53  ;;  %v2700_v53 = vor.u32 %v2914_v51, %v2697_v52  ;;  %v2207_v52 = vld [vmem:[%s3441_s28 + $0xa0] sm:$0xf] }
 0x292   : > { %v525_v56 = vsel %vm524_vm1, %v3038_v49, %v521_v54  ;;  %v2692_v49 = vor.u32 %v2913_v44, %v2689_v46  ;;  %v2607_v54 = vld [vmem:[%s3441_s28 + $0x3c0] sm:$0xf]  ;;  %1716 = vmatpush.bf16.msrb.mxu0 %v2700_v53  ;;  %v2295_v44 = vld [vmem:[%s3441_s28 + $0x148] sm:$0xf]  ;;  %v2803_v53 = vld [vmem:[%s3441_s28 + $0xec] sm:$0xf0] }
 0x293   : > { %v526_v57 = vmul.f32 %v525_v56, %v505_v38  ;;  %v2893_v56 = vld [vmem:[%s3441_s28 + $0x3c4] sm:$0xf]  ;;  %v2296_v47 = vor.u32 %v2824_v45, %v2295_v44  ;;  %v2543_v44 = vld [vmem:[%s3441_s28 + $0x330] sm:$0xf]  ;;  %v2885_v45 = vld [vmem:[%s3441_s28 + $0x37c] sm:$0xf0] }
 0x294   : > { %1690 = vmatpush.bf16.msrb.mxu2 %v2692_v49  ;;  %v2297_v49 = vld [vmem:[%s3441_s28 + $0x198] sm:$0xf0] }
 0x295   : > { %v528_v59 = vmul.f32 %v3023_v55, %v526_v57  ;;  %v2903_v55 = vld [vmem:[%s3441_s28 + $0x40c] sm:$0xf0]  ;;  %v2300_v51 = vor.u32 %v2814_v48, %v2297_v49  ;;  %v2545_v48 = vld [vmem:[%s3441_s28 + $0x380] sm:$0xf0]  ;;  %v2551_v49 = vld [vmem:[%s3441_s28 + $0x338] sm:$0xf] }
 0x296   : > { %v2608_v57 = vor.u32 %v2903_v55, %v2607_v54  ;;  %1717 = vmatpush.bf16.msrb.mxu0 %v2620_v1  ;;  %v2793_v54 = vld [vmem:[%s3441_s28 + $0xa4] sm:$0xf]  ;;  %v2208_v55 = vor.u32 %v2803_v53, %v2207_v52  ;;  %v2886_v52 = vld [vmem:[%s3441_s28 + $0x384] sm:$0xf0]  ;;  %v2876_v53 = vld [vmem:[%s3441_s28 + $0x33c] sm:$0xf] }
 0x297   : > { %v530_v60 = vadd.f32 %v3024_v58, %v528_v59  ;;  %v2609_v58 = vld [vmem:[%s3441_s28 + $0x410] sm:$0xf0]  ;;  %v2615_v59 = vld [vmem:[%s3441_s28 + $0x3c8] sm:$0xf] }
 0x298   : > { %v2612_v61 = vor.u32 %v2893_v56, %v2609_v58  ;;  %1678 = vmatpush.bf16.msra.mxu1 %v2608_v57  ;;  %v2209_v56 = vld [vmem:[%s3441_s28 + $0xf0] sm:$0xf0]  ;;  %v2215_v57 = vld [vmem:[%s3441_s28 + $0xa8] sm:$0xf]  ;;  %v2804_v58 = vld [vmem:[%s3441_s28 + $0xf4] sm:$0xf0] }
 0x299   : > { %2123 = vmatmul.msk.f32.vlgmr.msra.gmra.mxu3 %vm496_vm14, %v530_v60  ;;  %v2904_v60 = vld [vmem:[%s3441_s28 + $0x414] sm:$0xf0] }
 0x29a   : > { %v2616_v62 = vor.u32 %v2904_v60, %v2615_v59  ;;  %1691 = vmatpush.bf16.msrb.mxu2 %v2612_v61  ;;  %v2212_v59 = vor.u32 %v2793_v54, %v2209_v56  ;;  %v2216_v60 = vor.u32 %v2804_v58, %v2215_v57  ;;  %v2794_v61 = vld [vmem:[%s3441_s28 + $0xac] sm:$0xf]  ;;  %v2463_v58 = vld [vmem:[%s3441_s28 + $0x290] sm:$0xf] }
 0x29b   : > { %v2553_v54 = vld [vmem:[%s3441_s28 + $0x388] sm:$0xf0] }
 0x29c   : > { %1704 = vmatpush.bf16.msrb.mxu3 %v2616_v62  ;;  %v2217_v62 = vld [vmem:[%s3441_s28 + $0xf8] sm:$0xf0]  ;;  %v2556_v57 = vor.u32 %v2876_v53, %v2553_v54  ;;  %v2775_v53 = vld [vmem:[%s3441_s28 + $0x14] sm:$0xf] }
 0x29d   : > { %v2220_v0 = vor.u32 %v2794_v61, %v2217_v62  ;;  %v2855_v61 = vld [vmem:[%s3441_s28 + $0x294] sm:$0xf]  ;;  %v2465_v62 = vld [vmem:[%s3441_s28 + $0x2e0] sm:$0xf0] }
 0x31c   : > { %v559_v6 = vpop.f32.mrf.mxu3 }
 0x31d   : > { %v560_v7 = vadd.f32 %v3025_v5, %v559_v6  ;;  %v2528_v5 = vor.u32 %v2883_v3, %v2527_v2  ;;  %v2529_v6 = vld [vmem:[%s3441_s28 + $0x370] sm:$0xf0]  ;;  %v2127_v2 = vld [vmem:[%s3441_s28] sm:$0xf]  ;;  %v2783_v3 = vld [vmem:[%s3441_s28 + $0x4c] sm:$0xf0] }
 0x31f   : > { %vm562_vm2 = vcmp.ge.f32.partialorder %v560_v7, 0.0  ;;  %v563_v8 = vmul.f32 0.01, %v560_v7  ;;  %1679 = vmatpush.bf16.msra.mxu1 %v2528_v5  ;;  %v2128_v5 = vor.u32 %v2783_v3, %v2127_v2  ;;  %v2866_v2 = vld [vmem:[%s3441_s28 + $0x2e4] sm:$0xf0] }
 0x320   : > { %v2856_v3 = vld [vmem:[%s3441_s28 + $0x29c] sm:$0xf] }
 0x321   : > { %v564_v9 = vsel %vm562_vm2, %v560_v7, %v563_v8  ;;  %v2535_v7 = vld [vmem:[%s3441_s28 + $0x328] sm:$0xf]  ;;  %v2884_v8 = vld [vmem:[%s3441_s28 + $0x374] sm:$0xf0] }
 0x322   : > { %v566_v10 = vsel %vm565_vm3, %v564_v9, 0.0 }
 0x323   : > { %v567_v11 = vrot.slane %v566_v10, 4 }
 0x325   : > { %v568_v12 = vadd.f32 %v567_v11, %v566_v10  ;;  %v2536_v10 = vor.u32 %v2884_v8, %v2535_v7  ;;  %v2874_v11 = vld [vmem:[%s3441_s28 + $0x32c] sm:$0xf]  ;;  %v2135_v7 = vld [vmem:[%s3441_s28 + $0x8] sm:$0xf]  ;;  %v2784_v8 = vld [vmem:[%s3441_s28 + $0x54] sm:$0xf0] }
 0x327   : > { %v569_v13 = vrot.slane %v568_v12, 2  ;;  %1705 = vmatpush.bf16.msrb.mxu3 %v2536_v10 }
 0x329   : > { %v570_v14 = vadd.f32 %v569_v13, %v568_v12  ;;  %v2537_v12 = vld [vmem:[%s3441_s28 + $0x378] sm:$0xf0] }
 0x32a   : > { %v2540_v13 = vor.u32 %v2874_v11, %v2537_v12  ;;  %v2136_v11 = vor.u32 %v2784_v8, %v2135_v7  ;;  %v2774_v12 = vld [vmem:[%s3441_s28 + $0xc] sm:$0xf]  ;;  %v2383_v8 = vld [vmem:[%s3441_s28 + $0x1f0] sm:$0xf] }
 0x32b   : > { %v571_v15 = vrot.slane %v570_v14, 1 }
 0x32c   : > { %1718 = vmatpush.bf16.msrb.mxu0 %v2540_v13  ;;  %v2137_v13 = vld [vmem:[%s3441_s28 + $0x58] sm:$0xf0] }
 0x32d   : > { %v572_v16 = vadd.f32 %v571_v15, %v570_v14  ;;  %v2447_v14 = vld [vmem:[%s3441_s28 + $0x280] sm:$0xf]  ;;  %v2863_v15 = vld [vmem:[%s3441_s28 + $0x2cc] sm:$0xf0] }
 0x32f   : > { %v573_v17 = vmul.f32 %v572_v16, %v3451_v20  ;;  %v2853_v16 = vld [vmem:[%s3441_s28 + $0x284] sm:$0xf] }
 0x331   : > { %v574_v18 = vsub.f32 %v564_v9, %v573_v17  ;;  %v2532_v9 = vor.u32 %v2873_v4, %v2529_v6  ;;  %v2448_v17 = vor.u32 %v2863_v15, %v2447_v14  ;;  %v2773_v4 = vld [vmem:[%s3441_s28 + $0x4] sm:$0xf]  ;;  %v2129_v6 = vld [vmem:[%s3441_s28 + $0x50] sm:$0xf0]  ;;  %v2703_v14 = vld [vmem:[%s3441_s28 + $0x470] sm:$0xf] }
 0x332   : > { %v2132_v10 = vor.u32 %v2773_v4, %v2129_v6  ;;  %v2925_v15 = vld [vmem:[%s3441_s28 + $0x4bc] sm:$0xf0]  ;;  %v2473_v4 = vld [vmem:[%s3441_s28 + $0x2e8] sm:$0xf0] }
 0x333   : > { %v575_v19 = vmul.f32 %v574_v18, %v574_v18  ;;  %1692 = vmatpush.bf16.msrb.mxu2 %v2532_v9  ;;  %1680 = vmatpush.bf16.msra.mxu1 %v2448_v17  ;;  %v2140_v17 = vor.u32 %v2774_v12, %v2137_v13  ;;  %v2476_v7 = vor.u32 %v2856_v3, %v2473_v4  ;;  %v2385_v12 = vld [vmem:[%s3441_s28 + $0x240] sm:$0xf0]  ;;  %v2391_v13 = vld [vmem:[%s3441_s28 + $0x1f8] sm:$0xf] }
 0x335   : > { %v576_v21 = vsel %vm565_vm3, %v575_v19, 0.0  ;;  %v2455_v19 = vld [vmem:[%s3441_s28 + $0x288] sm:$0xf] }
 0x336   : > { %v577_v22 = vrot.slane %v576_v21, 4 }
 0x338   : > { %v578_v23 = vadd.f32 %v577_v22, %v576_v21  ;;  %v2864_v21 = vld [vmem:[%s3441_s28 + $0x2d4] sm:$0xf0] }
 0x33a   : > { %v579_v24 = vrot.slane %v578_v23, 2 }
 0x33c   : > { %v580_v25 = vadd.f32 %v579_v24, %v578_v23  ;;  %v2456_v23 = vor.u32 %v2864_v21, %v2455_v19  ;;  %v2854_v24 = vld [vmem:[%s3441_s28 + $0x28c] sm:$0xf]  ;;  %v2915_v19 = vld [vmem:[%s3441_s28 + $0x474] sm:$0xf]  ;;  %v2705_v21 = vld [vmem:[%s3441_s28 + $0x4c0] sm:$0xf0] }
 0x33e   : > { %v581_v26 = vrot.slane %v580_v25, 1  ;;  %1706 = vmatpush.bf16.msrb.mxu3 %v2456_v23 }
 0x340   : > { %v582_v27 = vadd.f32 %v581_v26, %v580_v25  ;;  %v2457_v25 = vld [vmem:[%s3441_s28 + $0x2d8] sm:$0xf0] }
 0x341   : > { %v2460_v26 = vor.u32 %v2854_v24, %v2457_v25  ;;  %v2708_v24 = vor.u32 %v2915_v19, %v2705_v21  ;;  %v2926_v25 = vld [vmem:[%s3441_s28 + $0x4c4] sm:$0xf0]  ;;  %v2393_v19 = vld [vmem:[%s3441_s28 + $0x248] sm:$0xf0] }
 0x342   : > { %v583_v28 = vmul.f32 %v582_v27, %v3451_v20  ;;  %v2367_v27 = vld [vmem:[%s3441_s28 + $0x1e0] sm:$0xf] }
 0x343   : > { %1719 = vmatpush.bf16.msrb.mxu0 %v2460_v26  ;;  %v2916_v26 = vld [vmem:[%s3441_s28 + $0x47c] sm:$0xf] }
 0x344   : > { %v584_v29 = vadd.f32 1e-05, %v583_v28  ;;  %v2843_v28 = vld [vmem:[%s3441_s28 + $0x22c] sm:$0xf0] }
 0x346   : > { %3039 = vrsqrt.f32 %v584_v29  ;;  %vm591_vm5 = vweird.f32 %v584_v29 }
 0x34c   : > { %v3040_v30 = vpop.eup %3039 }
 0x34d   : > { %v586_v31 = vmul.f32 %v3040_v30, %v584_v29  ;;  %vm592_vm4 = vweird.f32 %v3040_v30  ;;  %v2833_v29 = vld [vmem:[%s3441_s28 + $0x1e4] sm:$0xf] }
 0x34e   : > { %vm593_vm6 = vmor %vm591_vm5, %vm592_vm4 }
 0x34f   : > { %v587_v32 = vmul.f32 %v3040_v30, %v586_v31  ;;  %v2369_v31 = vld [vmem:[%s3441_s28 + $0x230] sm:$0xf0] }
 0x351   : > { %v588_v33 = vmul.f32 0.5, %v587_v32  ;;  %v2375_v32 = vld [vmem:[%s3441_s28 + $0x1e8] sm:$0xf] }
 0x353   : > { %v589_v34 = vsub.f32 1.5, %v588_v33  ;;  %v2844_v33 = vld [vmem:[%s3441_s28 + $0x234] sm:$0xf0] }
 0x355   : > { %v590_v35 = vmul.f32 %v3040_v30, %v589_v34  ;;  %v2372_v34 = vor.u32 %v2833_v29, %v2369_v31  ;;  %v2623_v29 = vld [vmem:[%s3441_s28 + $0x3d0] sm:$0xf] }
 0x357   : > { %v594_v37 = vsel %vm593_vm6, %v3040_v30, %v590_v35  ;;  %v2368_v30 = vor.u32 %v2843_v28, %v2367_v27  ;;  %v2376_v35 = vor.u32 %v2844_v33, %v2375_v32  ;;  %v2713_v28 = vld [vmem:[%s3441_s28 + $0x4c8] sm:$0xf0] }
 0x358   : > { %v595_v38 = vmul.f32 %v594_v37, %v574_v18  ;;  %v2449_v18 = vld [vmem:[%s3441_s28 + $0x2d0] sm:$0xf0]  ;;  %v2377_v37 = vld [vmem:[%s3441_s28 + $0x238] sm:$0xf0]  ;;  %v2716_v32 = vor.u32 %v2916_v26, %v2713_v28  ;;  %v2311_v28 = vld [vmem:[%s3441_s28 + $0x158] sm:$0xf] }
 0x359   : > { %v2452_v22 = vor.u32 %v2853_v16, %v2449_v18  ;;  %1681 = vmatpush.bf16.msra.mxu1 %v2368_v30  ;;  %1707 = vmatpush.bf16.msrb.mxu3 %v2376_v35  ;;  %v2704_v18 = vor.u32 %v2925_v15, %v2703_v14  ;;  %v2905_v30 = vld [vmem:[%s3441_s28 + $0x41c] sm:$0xf0]  ;;  %v2625_v35 = vld [vmem:[%s3441_s28 + $0x420] sm:$0xf0]  ;;  %v2846_v14 = vld [vmem:[%s3441_s28 + $0x244] sm:$0xf0] }
 0x35a   : > { %v597_v40 = vmul.f32 %v3026_v36, %v595_v38  ;;  %v2834_v36 = vld [vmem:[%s3441_s28 + $0x1ec] sm:$0xf]  ;;  %v2624_v33 = vor.u32 %v2905_v30, %v2623_v29  ;;  %v2392_v21 = vor.u32 %v2846_v14, %v2391_v13  ;;  %v2815_v26 = vld [vmem:[%s3441_s28 + $0x154] sm:$0xf]  ;;  %v2826_v29 = vld [vmem:[%s3441_s28 + $0x1a4] sm:$0xf0] }
 0x35b   : > { %1693 = vmatpush.bf16.msrb.mxu2 %v2452_v22  ;;  %v2380_v38 = vor.u32 %v2834_v36, %v2377_v37  ;;  %v2711_v22 = vld [vmem:[%s3441_s28 + $0x478] sm:$0xf]  ;;  %v2719_v13 = vld [vmem:[%s3441_s28 + $0x480] sm:$0xf]  ;;  %v2927_v14 = vld [vmem:[%s3441_s28 + $0x4cc] sm:$0xf0] }
 0x35c   : > { %v599_v41 = vadd.f32 %v3027_v39, %v597_v40  ;;  %v2287_v39 = vld [vmem:[%s3441_s28 + $0x140] sm:$0xf]  ;;  %v2823_v40 = vld [vmem:[%s3441_s28 + $0x18c] sm:$0xf0]  ;;  %v2712_v27 = vor.u32 %v2926_v25, %v2711_v22  ;;  %v2631_v36 = vld [vmem:[%s3441_s28 + $0x3d8] sm:$0xf] }
 0x35d   : > { %1720 = vmatpush.bf16.msrb.mxu0 %v2380_v38  ;;  %v2288_v42 = vor.u32 %v2823_v40, %v2287_v39  ;;  %1708 = vmatpush.bf16.msrb.mxu3 %v2296_v47  ;;  %v2906_v38 = vld [vmem:[%s3441_s28 + $0x424] sm:$0xf0]  ;;  %v2896_v39 = vld [vmem:[%s3441_s28 + $0x3dc] sm:$0xf]  ;;  %v2633_v40 = vld [vmem:[%s3441_s28 + $0x428] sm:$0xf0] }
 0x35e   : > { %2124 = vmatmul.msk.f32.vlgmr.msra.gmra.mxu0 %vm565_vm3, %v599_v41  ;;  %v2813_v41 = vld [vmem:[%s3441_s28 + $0x144] sm:$0xf]  ;;  %v2875_v47 = vld [vmem:[%s3441_s28 + $0x334] sm:$0xf]  ;;  %v2825_v25 = vld [vmem:[%s3441_s28 + $0x19c] sm:$0xf0] }
 0x35f   : > { %1694 = vmatpush.bf16.msrb.mxu2 %v2372_v34  ;;  %v2292_v46 = vor.u32 %v2813_v41, %v2289_v43  ;;  %1682 = vmatpush.bf16.msra.mxu1 %v2288_v42  ;;  %v2895_v34 = vld [vmem:[%s3441_s28 + $0x3d4] sm:$0xf]  ;;  %v2632_v42 = vor.u32 %v2906_v38, %v2631_v36  ;;  %v2636_v43 = vor.u32 %v2896_v39, %v2633_v40  ;;  %v2805_v38 = vld [vmem:[%s3441_s28 + $0xfc] sm:$0xf0] }
 0x360   : > { %v2628_v37 = vor.u32 %v2895_v34, %v2625_v35  ;;  %v2312_v34 = vor.u32 %v2826_v29, %v2311_v28  ;;  %v2795_v40 = vld [vmem:[%s3441_s28 + $0xb4] sm:$0xf] }
 0x361   : > { %1721 = vmatpush.bf16.msrb.mxu0 %v2300_v51  ;;  %1709 = vmatpush.bf16.msrb.mxu3 %v2216_v60  ;;  %v2548_v51 = vor.u32 %v2875_v47, %v2545_v48  ;;  %v2796_v47 = vld [vmem:[%s3441_s28 + $0xbc] sm:$0xf]  ;;  %v2233_v48 = vld [vmem:[%s3441_s28 + $0x108] sm:$0xf0] }
 0x363   : > { %1695 = vmatpush.bf16.msrb.mxu2 %v2292_v46  ;;  %1683 = vmatpush.bf16.msra.mxu1 %v2208_v55  ;;  %v2544_v46 = vor.u32 %v2885_v45, %v2543_v44  ;;  %v2552_v55 = vor.u32 %v2886_v52, %v2551_v49  ;;  %v2806_v45 = vld [vmem:[%s3441_s28 + $0x104] sm:$0xf0]  ;;  %v2785_v52 = vld [vmem:[%s3441_s28 + $0x5c] sm:$0xf0] }
 0x365   : > { %1722 = vmatpush.bf16.msrb.mxu0 %v2220_v0  ;;  %1710 = vmatpush.bf16.msrb.mxu3 %v2136_v11 }
 0x367   : > { %1696 = vmatpush.bf16.msrb.mxu2 %v2212_v59  ;;  %1684 = vmatpush.bf16.msra.mxu1 %v2128_v5  ;;  %v2865_v59 = vld [vmem:[%s3441_s28 + $0x2dc] sm:$0xf0] }
 0x368   : > { %v2464_v60 = vor.u32 %v2865_v59, %v2463_v58 }
 0x369   : > { %1723 = vmatpush.bf16.msrb.mxu0 %v2140_v17  ;;  %1755 = vmatpush.bf16.msra.mxu3 %v2712_v27  ;;  %v2305_v27 = vld [vmem:[%s3441_s28 + $0x1a0] sm:$0xf0] }
 0x36b   : > { %1697 = vmatpush.bf16.msrb.mxu2 %v2132_v10  ;;  %1729 = vmatpush.bf16.msrb.mxu1 %v2704_v18  ;;  %v2835_v10 = vld [vmem:[%s3441_s28 + $0x1f4] sm:$0xf]  ;;  %v2836_v18 = vld [vmem:[%s3441_s28 + $0x1fc] sm:$0xf] }
 0x36c   : > { %v2388_v17 = vor.u32 %v2835_v10, %v2385_v12 }
 0x36d   : > { %1768 = vmatpush.bf16.msra.mxu0 %v2716_v32  ;;  %1756 = vmatpush.bf16.msra.mxu3 %v2632_v42  ;;  %v2816_v32 = vld [vmem:[%s3441_s28 + $0x15c] sm:$0xf]  ;;  %v2231_v42 = vld [vmem:[%s3441_s28 + $0xb8] sm:$0xf] }
 0x36f   : > { %1742 = vmatpush.bf16.msra.mxu2 %v2708_v24  ;;  %1730 = vmatpush.bf16.msrb.mxu1 %v2624_v33  ;;  %v2303_v24 = vld [vmem:[%s3441_s28 + $0x150] sm:$0xf]  ;;  %v2313_v33 = vld [vmem:[%s3441_s28 + $0x1a8] sm:$0xf0] }
 0x370   : > { %v2316_v36 = vor.u32 %v2816_v32, %v2313_v33  ;;  %v2647_v32 = vld [vmem:[%s3441_s28 + $0x3e8] sm:$0xf]  ;;  %v2908_v33 = vld [vmem:[%s3441_s28 + $0x434] sm:$0xf0] }
 0x371   : > { %1769 = vmatpush.bf16.msra.mxu0 %v2636_v43  ;;  %1757 = vmatpush.bf16.msra.mxu3 %v2552_v55  ;;  %v2145_v55 = vld [vmem:[%s3441_s28 + $0x60] sm:$0xf0] }
 0x372   : > { %v2148_v59 = vor.u32 %v2775_v53, %v2145_v55  ;;  %v2481_v55 = vld [vmem:[%s3441_s28 + $0x2f0] sm:$0xf0] }
 0x373   : > { %1743 = vmatpush.bf16.msra.mxu2 %v2628_v37  ;;  %1731 = vmatpush.bf16.msrb.mxu1 %v2544_v46  ;;  %v2223_v37 = vld [vmem:[%s3441_s28 + $0xb0] sm:$0xf]  ;;  %v2232_v46 = vor.u32 %v2806_v45, %v2231_v42  ;;  %v2877_v42 = vld [vmem:[%s3441_s28 + $0x344] sm:$0xf]  ;;  %v2888_v45 = vld [vmem:[%s3441_s28 + $0x394] sm:$0xf0] }
 0x374   : > { %v2224_v39 = vor.u32 %v2805_v38, %v2223_v37  ;;  %v2559_v38 = vld [vmem:[%s3441_s28 + $0x340] sm:$0xf] }
 0x375   : > { %1770 = vmatpush.bf16.msra.mxu0 %v2556_v57  ;;  %v2786_v57 = vld [vmem:[%s3441_s28 + $0x64] sm:$0xf0] }
 0x377   : > { %1744 = vmatpush.bf16.msra.mxu2 %v2548_v51  ;;  %1732 = vmatpush.bf16.msrb.mxu1 %v2464_v60  ;;  %v2143_v51 = vld [vmem:[%s3441_s28 + $0x10] sm:$0xf]  ;;  %v2776_v60 = vld [vmem:[%s3441_s28 + $0x1c] sm:$0xf] }
 0x378   : > { %v2144_v54 = vor.u32 %v2785_v52, %v2143_v51  ;;  %v2867_v51 = vld [vmem:[%s3441_s28 + $0x2ec] sm:$0xf0] }
 0x379   : > { %1771 = vmatpush.bf16.msra.mxu0 %v2476_v7 }
 0x3db   : > { %v632_v63 = vpop.f32.mrf.mxu0 }
 0x3dc   : > { %v633_v1 = vadd.f32 %v3028_v50, %v632_v63  ;;  %v2471_v63 = vld [vmem:[%s3441_s28 + $0x298] sm:$0xf] }
 0x3dd   : > { %v2472_v5 = vor.u32 %v2866_v2, %v2471_v63 }
 0x3de   : > { %vm635_vm7 = vcmp.ge.f32.partialorder %v633_v1, 0.0  ;;  %v636_v9 = vmul.f32 0.01, %v633_v1 }
 0x3df   : > { %1758 = vmatpush.bf16.msra.mxu3 %v2472_v5 }
 0x3e0   : > { %v3538_v16 = vsel %vm635_vm7, %v633_v1, %v636_v9  ;;  %v2468_v1 = vor.u32 %v2855_v61, %v2465_v62  ;;  %v2845_v9 = vld [vmem:[%s3441_s28 + $0x23c] sm:$0xf0]  ;;  %v2153_v61 = vld [vmem:[%s3441_s28 + $0x68] sm:$0xf0] }
 0x3e1   : > { %v638_v23 = vrot.slane %v3538_v16, 4  ;;  %v2384_v11 = vor.u32 %v2845_v9, %v2383_v8 }
 0x3e2   : > { %1745 = vmatpush.bf16.msra.mxu2 %v2468_v1 }
 0x3e3   : > { %v639_v31 = vadd.f32 %v638_v23, %v3538_v16  ;;  %v2396_v23 = vor.u32 %v2836_v18, %v2393_v19  ;;  %1733 = vmatpush.bf16.msrb.mxu1 %v2384_v11  ;;  %1759 = vmatpush.bf16.msra.mxu3 %v2392_v21  ;;  %v3030_v11 = vld [vmem:[#allocation5 + $0xe] ss:$0 sm:$0xff]  ;;  %v2721_v18 = vld [vmem:[%s3441_s28 + $0x4d0] sm:$0xf0]  ;;  %v2727_v19 = vld [vmem:[%s3441_s28 + $0x488] sm:$0xf] }
 0x3e5   : > { %v640_v41 = vrot.slane %v639_v31, 2  ;;  %1772 = vmatpush.bf16.msra.mxu0 %v2396_v23  ;;  %v2918_v23 = vld [vmem:[%s3441_s28 + $0x48c] sm:$0xf] }
 0x3e6   : > { %1746 = vmatpush.bf16.msra.mxu2 %v2388_v17  ;;  %v2917_v17 = vld [vmem:[%s3441_s28 + $0x484] sm:$0xf] }
 0x3e7   : > { %v641_v50 = vadd.f32 %v640_v41, %v639_v31  ;;  %v2308_v31 = vor.u32 %v2815_v26, %v2305_v27  ;;  %v2225_v41 = vld [vmem:[%s3441_s28 + $0x100] sm:$0xf0]  ;;  %1760 = vmatpush.bf16.msra.mxu3 %v2312_v34  ;;  %v2724_v26 = vor.u32 %v2917_v17, %v2721_v18  ;;  %v2907_v27 = vld [vmem:[%s3441_s28 + $0x42c] sm:$0xf0]  ;;  %v2898_v34 = vld [vmem:[%s3441_s28 + $0x3ec] sm:$0xf] }
 0x3e8   : > { %v2228_v44 = vor.u32 %v2795_v40, %v2225_v41  ;;  %v2648_v40 = vor.u32 %v2908_v33, %v2647_v32  ;;  %v2327_v17 = vld [vmem:[%s3441_s28 + $0x168] sm:$0xf]  ;;  %v2828_v18 = vld [vmem:[%s3441_s28 + $0x1b4] sm:$0xf0]  ;;  %v2249_v32 = vld [vmem:[%s3441_s28 + $0x118] sm:$0xf0] }
 0x3e9   : > { %v642_v56 = vrot.slane %v641_v50, 1  ;;  %1773 = vmatpush.bf16.msra.mxu0 %v2316_v36  ;;  %v2159_v33 = vld [vmem:[%s3441_s28 + $0x20] sm:$0xf] }
 0x3ea   : > { %1747 = vmatpush.bf16.msra.mxu2 %v2308_v31  ;;  %v2641_v31 = vld [vmem:[%s3441_s28 + $0x430] sm:$0xf0] }
 0x3eb   : > { %v643_v0 = vadd.f32 %v642_v56, %v641_v50  ;;  %v2236_v50 = vor.u32 %v2796_v47, %v2233_v48  ;;  %v2151_v56 = vld [vmem:[%s3441_s28 + $0x18] sm:$0xf]  ;;  %1761 = vmatpush.bf16.msra.mxu3 %v2232_v46  ;;  %v2878_v46 = vld [vmem:[%s3441_s28 + $0x34c] sm:$0xf]  ;;  %v2569_v47 = vld [vmem:[%s3441_s28 + $0x398] sm:$0xf0] }
 0x3ec   : > { %v2152_v62 = vor.u32 %v2786_v57, %v2151_v56  ;;  %v2572_v53 = vor.u32 %v2878_v46, %v2569_v47  ;;  %v2487_v56 = vld [vmem:[%s3441_s28 + $0x2a8] sm:$0xf]  ;;  %v2868_v57 = vld [vmem:[%s3441_s28 + $0x2f4] sm:$0xf0]  ;;  %v2929_v46 = vld [vmem:[%s3441_s28 + $0x4dc] sm:$0xf0] }
 0x3ed   : > { %v644_v6 = vmul.f32 %v643_v0, %v3451_v20  ;;  %1774 = vmatpush.bf16.msra.mxu0 %v2236_v50  ;;  %v2156_v0 = vor.u32 %v2776_v60, %v2153_v61  ;;  %v2479_v50 = vld [vmem:[%s3441_s28 + $0x2a0] sm:$0xf]  ;;  %v2919_v47 = vld [vmem:[%s3441_s28 + $0x494] sm:$0xf] }
 0x3ee   : > { %1748 = vmatpush.bf16.msra.mxu2 %v2228_v44  ;;  %v2567_v44 = vld [vmem:[%s3441_s28 + $0x348] sm:$0xf]  ;;  %v2480_v60 = vor.u32 %v2867_v51, %v2479_v50 }
 0x3ef   : > { %v3580_v15 = vsub.f32 %v3538_v16, %v644_v6  ;;  %v2304_v16 = vor.u32 %v2825_v25, %v2303_v24  ;;  %1762 = vmatpush.bf16.msra.mxu3 %v2152_v62  ;;  %v2729_v24 = vld [vmem:[%s3441_s28 + $0x4d8] sm:$0xf0]  ;;  %v2568_v52 = vor.u32 %v2888_v45, %v2567_v44  ;;  %v2399_v62 = vld [vmem:[%s3441_s28 + $0x200] sm:$0xf]  ;;  %v2735_v45 = vld [vmem:[%s3441_s28 + $0x490] sm:$0xf] }
 0x3f0   : > { %v2732_v29 = vor.u32 %v2918_v23, %v2729_v24  ;;  %v2239_v24 = vld [vmem:[%s3441_s28 + $0xc0] sm:$0xf]  ;;  %v2169_v44 = vld [vmem:[%s3441_s28 + $0x78] sm:$0xf0] }
 0x3f1   : > { %v646_v22 = vmul.f32 %v3580_v15, %v3580_v15  ;;  %1734 = vmatpush.bf16.msrb.mxu1 %v2304_v16  ;;  %1775 = vmatpush.bf16.msra.mxu0 %v2156_v0  ;;  %v2639_v16 = vld [vmem:[%s3441_s28 + $0x3e0] sm:$0xf]  ;;  %v2488_v0 = vor.u32 %v2868_v57, %v2487_v56  ;;  %v2736_v57 = vor.u32 %v2929_v46, %v2735_v45 }
 0x3f2   : > { %1749 = vmatpush.bf16.msra.mxu2 %v2148_v59  ;;  %v2640_v36 = vor.u32 %v2907_v27, %v2639_v16  ;;  %v2489_v59 = vld [vmem:[%s3441_s28 + $0x2f8] sm:$0xf0]  ;;  %v2797_v27 = vld [vmem:[%s3441_s28 + $0xc4] sm:$0xf]  ;;  %v2829_v45 = vld [vmem:[%s3441_s28 + $0x1bc] sm:$0xf0] }
 0x3f3   : > { %v647_v30 = vrot.slane %v646_v22, 4 }
 0x3f5   : > { %v648_v35 = vadd.f32 %v647_v30, %v646_v22  ;;  %1735 = vmatpush.bf16.msrb.mxu1 %v2224_v39  ;;  %v2928_v22 = vld [vmem:[%s3441_s28 + $0x4d4] sm:$0xf0]  ;;  %v2897_v30 = vld [vmem:[%s3441_s28 + $0x3e4] sm:$0xf]  ;;  %v2887_v39 = vld [vmem:[%s3441_s28 + $0x38c] sm:$0xf0] }
 0x3f6   : > { %v2728_v28 = vor.u32 %v2928_v22, %v2727_v19  ;;  %v2644_v37 = vor.u32 %v2897_v30, %v2641_v31  ;;  %v2560_v48 = vor.u32 %v2887_v39, %v2559_v38  ;;  %v2818_v19 = vld [vmem:[%s3441_s28 + $0x16c] sm:$0xf]  ;;  %v2808_v30 = vld [vmem:[%s3441_s28 + $0x114] sm:$0xf0]  ;;  %v2161_v38 = vld [vmem:[%s3441_s28 + $0x70] sm:$0xf0] }
 0x3f7   : > { %v649_v43 = vrot.slane %v648_v35, 2  ;;  %v2798_v31 = vld [vmem:[%s3441_s28 + $0xcc] sm:$0xf] }
 0x3f9   : > { %v650_v49 = vadd.f32 %v649_v43, %v648_v35  ;;  %1736 = vmatpush.bf16.msrb.mxu1 %v2144_v54  ;;  %v2649_v35 = vld [vmem:[%s3441_s28 + $0x438] sm:$0xf0]  ;;  %v2561_v43 = vld [vmem:[%s3441_s28 + $0x390] sm:$0xf0]  ;;  %v2857_v54 = vld [vmem:[%s3441_s28 + $0x2a4] sm:$0xf] }
 0x3fa   : > { %v2652_v41 = vor.u32 %v2898_v34, %v2649_v35  ;;  %v2484_v61 = vor.u32 %v2857_v54, %v2481_v55  ;;  %v2745_v54 = vld [vmem:[%s3441_s28 + $0x4e8] sm:$0xf0] }
 0x3fb   : > { %v651_v58 = vrot.slane %v650_v49, 1 }
 0x3fd   : > { %v652_v63 = vadd.f32 %v651_v58, %v650_v49  ;;  %v2564_v49 = vor.u32 %v2877_v42, %v2561_v43  ;;  %v2858_v58 = vld [vmem:[%s3441_s28 + $0x2ac] sm:$0xf]  ;;  %v2788_v42 = vld [vmem:[%s3441_s28 + $0x74] sm:$0xf0] }
 0x3fe   : > { %v2778_v43 = vld [vmem:[%s3441_s28 + $0x2c] sm:$0xf] }
 0x3ff   : > { %v653_v1 = vmul.f32 %v652_v63, %v3451_v20  ;;  %v3029_v20 = vld [vmem:[#allocation5 + $0x9] ss:$0 sm:$0xff]  ;;  %v2847_v63 = vld [vmem:[%s3441_s28 + $0x24c] sm:$0xf0]  ;;  %v2172_v56 = vor.u32 %v2778_v43, %v2169_v44 }
 0x400   : > { %v2335_v44 = vld [vmem:[%s3441_s28 + $0x170] sm:$0xf] }
 0x401   : > { %v654_v2 = vadd.f32 1e-05, %v653_v1  ;;  %v2492_v1 = vor.u32 %v2858_v58, %v2489_v59  ;;  %v2655_v59 = vld [vmem:[%s3441_s28 + $0x3f0] sm:$0xf] }
 0x403   : > { %3041 = vrsqrt.f32 %v654_v2  ;;  %vm661_vm9 = vweird.f32 %v654_v2 }
 0x409   : > { %v3042_v3 = vpop.eup %3041 }
 0x40a   : > { %v656_v4 = vmul.f32 %v3042_v3, %v654_v2  ;;  %vm662_vm8 = vweird.f32 %v3042_v3  ;;  %v2837_v2 = vld [vmem:[%s3441_s28 + $0x204] sm:$0xf] }
 0x40b   : > { %vm663_vm10 = vmor %vm661_vm9, %vm662_vm8 }
 0x40c   : > { %v657_v5 = vmul.f32 %v3042_v3, %v656_v4  ;;  %v2407_v4 = vld [vmem:[%s3441_s28 + $0x208] sm:$0xf] }
 0x40e   : > { %v658_v6 = vmul.f32 0.5, %v657_v5  ;;  %v2848_v5 = vld [vmem:[%s3441_s28 + $0x254] sm:$0xf0] }
 0x410   : > { %v659_v7 = vsub.f32 1.5, %v658_v6  ;;  %v2838_v6 = vld [vmem:[%s3441_s28 + $0x20c] sm:$0xf] }
 0x412   : > { %v660_v8 = vmul.f32 %v3042_v3, %v659_v7  ;;  %v2409_v7 = vld [vmem:[%s3441_s28 + $0x258] sm:$0xf0] }
 0x414   : > { %v664_v9 = vsel %vm663_vm10, %v3042_v3, %v660_v8  ;;  %v2401_v3 = vld [vmem:[%s3441_s28 + $0x250] sm:$0xf0]  ;;  %v2400_v8 = vor.u32 %v2847_v63, %v2399_v62 }
 0x415   : > { %v665_v10 = vmul.f32 %v664_v9, %v3580_v15  ;;  %v2720_v15 = vor.u32 %v2927_v14, %v2719_v13  ;;  %v2319_v9 = vld [vmem:[%s3441_s28 + $0x160] sm:$0xf]  ;;  %v2817_v13 = vld [vmem:[%s3441_s28 + $0x164] sm:$0xf]  ;;  %v2321_v14 = vld [vmem:[%s3441_s28 + $0x1b0] sm:$0xf0] }
 0x416   : > { %v2324_v23 = vor.u32 %v2817_v13, %v2321_v14  ;;  %v2899_v63 = vld [vmem:[%s3441_s28 + $0x3f4] sm:$0xf]  ;;  %v2890_v13 = vld [vmem:[%s3441_s28 + $0x3a4] sm:$0xf0]  ;;  %v2880_v14 = vld [vmem:[%s3441_s28 + $0x35c] sm:$0xf] }
 0x417   : > { %v667_v12 = vmul.f32 %v3029_v20, %v665_v10  ;;  %v2404_v20 = vor.u32 %v2837_v2, %v2401_v3  ;;  %v2827_v10 = vld [vmem:[%s3441_s28 + $0x1ac] sm:$0xf0]  ;;  %v2910_v2 = vld [vmem:[%s3441_s28 + $0x444] sm:$0xf0]  ;;  %v2900_v3 = vld [vmem:[%s3441_s28 + $0x3fc] sm:$0xf] }
 0x418   : > { %v2320_v22 = vor.u32 %v2827_v10, %v2319_v9  ;;  %v2879_v10 = vld [vmem:[%s3441_s28 + $0x354] sm:$0xf] }
 0x419   : > { %v669_v21 = vadd.f32 %v3030_v11, %v667_v12  ;;  %v2408_v11 = vor.u32 %v2848_v5, %v2407_v4  ;;  %v2412_v12 = vor.u32 %v2838_v6, %v2409_v7  ;;  %v2665_v4 = vld [vmem:[%s3441_s28 + $0x448] sm:$0xf0]  ;;  %v2575_v7 = vld [vmem:[%s3441_s28 + $0x350] sm:$0xf] }
 0x41a   : > { %v2668_v9 = vor.u32 %v2900_v3, %v2665_v4 }
 0x41b   : > { %v3620_v25 = vpack.c.bf16 %v669_v21, %v669_v21  ;;  %v2329_v21 = vld [vmem:[%s3441_s28 + $0x1b8] sm:$0xf0] }
 0x41c   : > { %v2332_v16 = vor.u32 %v2818_v19, %v2329_v21  ;;  %v2495_v21 = vld [vmem:[%s3441_s28 + $0x2b0] sm:$0xf] }
 0x41d   : > { %1685 = vmatmul.bf16.vlgmr.msra.gmra.mxu1 %v3620_v25  ;;  %1698 = vmatmul.bf16.vlgmr.msrb.gmra.mxu2 %v3620_v25 }
 0x41e   : > { %1711 = vmatmul.bf16.vlgmr.msrb.gmra.mxu3 %v3620_v25  ;;  %1724 = vmatmul.bf16.vlgmr.msrb.gmra.mxu0 %v3620_v25 }
 0x41f   : > { %1781 = vmatpush.bf16.msra.mxu1 %v2720_v15  ;;  %1794 = vmatpush.bf16.msrb.mxu2 %v2724_v26  ;;  %v2807_v15 = vld [vmem:[%s3441_s28 + $0x10c] sm:$0xf0]  ;;  %v2328_v26 = vor.u32 %v2828_v18, %v2327_v17  ;;  %v2585_v17 = vld [vmem:[%s3441_s28 + $0x3a8] sm:$0xf0] }
 0x420   : > { %1807 = vmatpush.bf16.msrb.mxu3 %v2728_v28  ;;  %1820 = vmatpush.bf16.msrb.mxu0 %v2732_v29  ;;  %v2241_v28 = vld [vmem:[%s3441_s28 + $0x110] sm:$0xf0]  ;;  %v2247_v29 = vld [vmem:[%s3441_s28 + $0xc8] sm:$0xf]  ;;  %v2240_v34 = vor.u32 %v2807_v15, %v2239_v24  ;;  %v2588_v24 = vor.u32 %v2880_v14, %v2585_v17  ;;  %v2931_v14 = vld [vmem:[%s3441_s28 + $0x4ec] sm:$0xf0] }
 0x421   : > { %v2244_v35 = vor.u32 %v2797_v27, %v2241_v28  ;;  %v2248_v39 = vor.u32 %v2808_v30, %v2247_v29  ;;  %v2859_v15 = vld [vmem:[%s3441_s28 + $0x2b4] sm:$0xf]  ;;  %v2870_v27 = vld [vmem:[%s3441_s28 + $0x304] sm:$0xf0]  ;;  %v2860_v28 = vld [vmem:[%s3441_s28 + $0x2bc] sm:$0xf] }
 0x422   : > { %v2505_v29 = vld [vmem:[%s3441_s28 + $0x308] sm:$0xf0]  ;;  %v2921_v17 = vld [vmem:[%s3441_s28 + $0x4a4] sm:$0xf] }
 0x423   : > { %1782 = vmatpush.bf16.msra.mxu1 %v2640_v36  ;;  %1795 = vmatpush.bf16.msrb.mxu2 %v2644_v37  ;;  %v2787_v36 = vld [vmem:[%s3441_s28 + $0x6c] sm:$0xf0]  ;;  %v2777_v37 = vld [vmem:[%s3441_s28 + $0x24] sm:$0xf] }
 0x424   : > { %1808 = vmatpush.bf16.msrb.mxu3 %v2648_v40  ;;  %1821 = vmatpush.bf16.msrb.mxu0 %v2652_v41  ;;  %v2252_v40 = vor.u32 %v2798_v31, %v2249_v32  ;;  %v2167_v41 = vld [vmem:[%s3441_s28 + $0x28] sm:$0xf]  ;;  %v2160_v50 = vor.u32 %v2787_v36, %v2159_v33  ;;  %v2164_v51 = vor.u32 %v2777_v37, %v2161_v38  ;;  %v2415_v32 = vld [vmem:[%s3441_s28 + $0x210] sm:$0xf]  ;;  %v2849_v33 = vld [vmem:[%s3441_s28 + $0x25c] sm:$0xf0] }
 0x425   : > { %v2168_v55 = vor.u32 %v2788_v42, %v2167_v41  ;;  %v2839_v36 = vld [vmem:[%s3441_s28 + $0x214] sm:$0xf]  ;;  %v2417_v37 = vld [vmem:[%s3441_s28 + $0x260] sm:$0xf0]  ;;  %v2423_v38 = vld [vmem:[%s3441_s28 + $0x218] sm:$0xf]  ;;  %v2416_v42 = vor.u32 %v2849_v33, %v2415_v32 }
 0x426   : > { %v2425_v41 = vld [vmem:[%s3441_s28 + $0x268] sm:$0xf0]  ;;  %v2420_v43 = vor.u32 %v2839_v36, %v2417_v37  ;;  %v2901_v33 = vld [vmem:[%s3441_s28 + $0x404] sm:$0xf]  ;;  %v2912_v36 = vld [vmem:[%s3441_s28 + $0x454] sm:$0xf0] }
 0x427   : > { %1783 = vmatpush.bf16.msra.mxu1 %v2560_v48  ;;  %1796 = vmatpush.bf16.msrb.mxu2 %v2564_v49  ;;  %v2737_v48 = vld [vmem:[%s3441_s28 + $0x4e0] sm:$0xf0]  ;;  %v2743_v49 = vld [vmem:[%s3441_s28 + $0x498] sm:$0xf]  ;;  %v2902_v37 = vld [vmem:[%s3441_s28 + $0x40c] sm:$0xf] }
 0x428   : > { %1809 = vmatpush.bf16.msrb.mxu3 %v2568_v52  ;;  %1822 = vmatpush.bf16.msrb.mxu0 %v2572_v53  ;;  %v2930_v52 = vld [vmem:[%s3441_s28 + $0x4e4] sm:$0xf0]  ;;  %v2920_v53 = vld [vmem:[%s3441_s28 + $0x49c] sm:$0xf]  ;;  %v2740_v58 = vor.u32 %v2919_v47, %v2737_v48  ;;  %v2819_v48 = vld [vmem:[%s3441_s28 + $0x174] sm:$0xf] }
 0x429   : > { %v2748_v62 = vor.u32 %v2920_v53, %v2745_v54  ;;  %v2345_v53 = vld [vmem:[%s3441_s28 + $0x1c8] sm:$0xf0]  ;;  %v2336_v54 = vor.u32 %v2829_v45, %v2335_v44  ;;  %v2881_v45 = vld [vmem:[%s3441_s28 + $0x364] sm:$0xf] }
 0x42b   : > { %1784 = vmatpush.bf16.msra.mxu1 %v2480_v60  ;;  %1797 = vmatpush.bf16.msrb.mxu2 %v2484_v61  ;;  %v2909_v60 = vld [vmem:[%s3441_s28 + $0x43c] sm:$0xf0]  ;;  %v2744_v61 = vor.u32 %v2930_v52, %v2743_v49  ;;  %v2337_v49 = vld [vmem:[%s3441_s28 + $0x1c0] sm:$0xf0]  ;;  %v2820_v52 = vld [vmem:[%s3441_s28 + $0x17c] sm:$0xf] }
 0x42c   : > { %1810 = vmatpush.bf16.msrb.mxu3 %v2488_v0  ;;  %1823 = vmatpush.bf16.msrb.mxu0 %v2492_v1  ;;  %v2657_v0 = vld [vmem:[%s3441_s28 + $0x440] sm:$0xf0]  ;;  %v2663_v1 = vld [vmem:[%s3441_s28 + $0x3f8] sm:$0xf]  ;;  %v2656_v5 = vor.u32 %v2909_v60, %v2655_v59  ;;  %v2348_v59 = vor.u32 %v2820_v52, %v2345_v53  ;;  %v2799_v60 = vld [vmem:[%s3441_s28 + $0xd4] sm:$0xf] }
 0x42d   : > { %1737 = vmatmul.bf16.vlgmr.msrb.gmra.mxu1 %v3620_v25  ;;  %1750 = vmatmul.bf16.vlgmr.msra.gmra.mxu2 %v3620_v25  ;;  %v2660_v6 = vor.u32 %v2899_v63, %v2657_v0  ;;  %v2810_v63 = vld [vmem:[%s3441_s28 + $0x124] sm:$0xf0]  ;;  %v2800_v0 = vld [vmem:[%s3441_s28 + $0xdc] sm:$0xf]  ;;  %v2511_v53 = vld [vmem:[%s3441_s28 + $0x2c0] sm:$0xf] }
 0x42e   : > { %1763 = vmatmul.bf16.vlgmr.msra.gmra.mxu3 %v3620_v25  ;;  %1776 = vmatmul.bf16.vlgmr.msra.gmra.mxu0 %v3620_v25 }
 0x42f   : > { %1785 = vmatpush.bf16.msra.mxu1 %v2400_v8  ;;  %1798 = vmatpush.bf16.msrb.mxu2 %v2404_v20  ;;  %v2889_v8 = vld [vmem:[%s3441_s28 + $0x39c] sm:$0xf0]  ;;  %v2664_v20 = vor.u32 %v2910_v2, %v2663_v1  ;;  %v2265_v1 = vld [vmem:[%s3441_s28 + $0x128] sm:$0xf0]  ;;  %v2175_v2 = vld [vmem:[%s3441_s28 + $0x30] sm:$0xf] }
 0x430   : > { %1811 = vmatpush.bf16.msrb.mxu3 %v2408_v11  ;;  %1824 = vmatpush.bf16.msrb.mxu0 %v2412_v12  ;;  %v2577_v11 = vld [vmem:[%s3441_s28 + $0x3a0] sm:$0xf0]  ;;  %v2583_v12 = vld [vmem:[%s3441_s28 + $0x358] sm:$0xf]  ;;  %v2576_v18 = vor.u32 %v2889_v8, %v2575_v7 }
 0x431   : > { %v2580_v19 = vor.u32 %v2879_v10, %v2577_v11  ;;  %v2177_v7 = vld [vmem:[%s3441_s28 + $0x80] sm:$0xf0]  ;;  %v2790_v10 = vld [vmem:[%s3441_s28 + $0x84] sm:$0xf0]  ;;  %v2780_v11 = vld [vmem:[%s3441_s28 + $0x3c] sm:$0xf] }
 0x433   : > { %1786 = vmatpush.bf16.msra.mxu1 %v2320_v22  ;;  %1799 = vmatpush.bf16.msrb.mxu2 %v2324_v23  ;;  %v2869_v22 = vld [vmem:[%s3441_s28 + $0x2fc] sm:$0xf0]  ;;  %v2584_v23 = vor.u32 %v2890_v13, %v2583_v12  ;;  %v2185_v12 = vld [vmem:[%s3441_s28 + $0x88] sm:$0xf0] }
 0x434   : > { %1812 = vmatpush.bf16.msrb.mxu3 %v2328_v26  ;;  %1825 = vmatpush.bf16.msrb.mxu0 %v2332_v16  ;;  %v2497_v26 = vld [vmem:[%s3441_s28 + $0x300] sm:$0xf0]  ;;  %v2503_v16 = vld [vmem:[%s3441_s28 + $0x2b8] sm:$0xf]  ;;  %v2496_v30 = vor.u32 %v2869_v22, %v2495_v21  ;;  %v2751_v13 = vld [vmem:[%s3441_s28 + $0x4a0] sm:$0xf] }
 0x435   : > { %v2500_v31 = vor.u32 %v2859_v15, %v2497_v26  ;;  %v2761_v15 = vld [vmem:[%s3441_s28 + $0x4f8] sm:$0xf0] }
 0x437   : > { %1787 = vmatpush.bf16.msra.mxu1 %v2240_v34  ;;  %1800 = vmatpush.bf16.msrb.mxu2 %v2244_v35  ;;  %v2504_v34 = vor.u32 %v2870_v27, %v2503_v16  ;;  %v2508_v35 = vor.u32 %v2860_v28, %v2505_v29  ;;  %v2188_v16 = vor.u32 %v2780_v11, %v2185_v12  ;;  %v2671_v29 = vld [vmem:[%s3441_s28 + $0x400] sm:$0xf] }
 0x438   : > { %1813 = vmatpush.bf16.msrb.mxu3 %v2248_v39  ;;  %1826 = vmatpush.bf16.msrb.mxu0 %v2252_v40  ;;  %v2850_v39 = vld [vmem:[%s3441_s28 + $0x264] sm:$0xf0]  ;;  %v2840_v40 = vld [vmem:[%s3441_s28 + $0x21c] sm:$0xf]  ;;  %v2752_v27 = vor.u32 %v2931_v14, %v2751_v13  ;;  %v2351_v12 = vld [vmem:[%s3441_s28 + $0x180] sm:$0xf] }
 0x439   : > { %v2424_v46 = vor.u32 %v2850_v39, %v2423_v38  ;;  %v2428_v47 = vor.u32 %v2840_v40, %v2425_v41  ;;  %v2681_v38 = vld [vmem:[%s3441_s28 + $0x458] sm:$0xf0]  ;;  %v2591_v41 = vld [vmem:[%s3441_s28 + $0x360] sm:$0xf]  ;;  %v2831_v13 = vld [vmem:[%s3441_s28 + $0x1cc] sm:$0xf0] }
 0x43a   : > { %v2684_v44 = vor.u32 %v2902_v37, %v2681_v38  ;;  %v2191_v38 = vld [vmem:[%s3441_s28 + $0x40] sm:$0xf] }
 0x43b   : > { %1788 = vmatpush.bf16.msra.mxu1 %v2160_v50  ;;  %1801 = vmatpush.bf16.msrb.mxu2 %v2164_v51  ;;  %v2343_v50 = vld [vmem:[%s3441_s28 + $0x178] sm:$0xf]  ;;  %v2830_v51 = vld [vmem:[%s3441_s28 + $0x1c4] sm:$0xf0] }
 0x43c   : > { %1814 = vmatpush.bf16.msrb.mxu3 %v2168_v55  ;;  %1827 = vmatpush.bf16.msrb.mxu0 %v2172_v56  ;;  %v2340_v55 = vor.u32 %v2819_v48, %v2337_v49  ;;  %v2255_v56 = vld [vmem:[%s3441_s28 + $0xd0] sm:$0xf]  ;;  %v2892_v48 = vld [vmem:[%s3441_s28 + $0x3b4] sm:$0xf0]  ;;  %v2882_v49 = vld [vmem:[%s3441_s28 + $0x36c] sm:$0xf] }
 0x43e   : > { %1789 = vmatmul.bf16.vlgmr.msra.gmra.mxu1 %v3620_v25  ;;  %1802 = vmatmul.bf16.vlgmr.msrb.gmra.mxu2 %v3620_v25 }
 0x43f   : > { %1833 = vmatpush.bf16.msrb.mxu1 %v2736_v57  ;;  %1846 = vmatpush.bf16.msra.mxu2 %v2740_v58  ;;  %v2809_v57 = vld [vmem:[%s3441_s28 + $0x11c] sm:$0xf0]  ;;  %v2344_v58 = vor.u32 %v2830_v51, %v2343_v50  ;;  %v2601_v50 = vld [vmem:[%s3441_s28 + $0x3b8] sm:$0xf0] }
 0x440   : > { %1859 = vmatpush.bf16.msra.mxu3 %v2744_v61  ;;  %1872 = vmatpush.bf16.msra.mxu0 %v2748_v62  ;;  %v2257_v61 = vld [vmem:[%s3441_s28 + $0x120] sm:$0xf0]  ;;  %v2263_v62 = vld [vmem:[%s3441_s28 + $0xd8] sm:$0xf]  ;;  %v2256_v3 = vor.u32 %v2809_v57, %v2255_v56  ;;  %v2604_v56 = vor.u32 %v2882_v49, %v2601_v50 }
 0x441   : > { %1815 = vmatmul.bf16.vlgmr.msrb.gmra.mxu3 %v3620_v25  ;;  %1828 = vmatmul.bf16.vlgmr.msrb.gmra.mxu0 %v3620_v25  ;;  %v2260_v4 = vor.u32 %v2799_v60, %v2257_v61  ;;  %v2264_v8 = vor.u32 %v2810_v63, %v2263_v62  ;;  %v2861_v57 = vld [vmem:[%s3441_s28 + $0x2c4] sm:$0xf]  ;;  %v2872_v60 = vld [vmem:[%s3441_s28 + $0x314] sm:$0xf0]  ;;  %v2862_v61 = vld [vmem:[%s3441_s28 + $0x2cc] sm:$0xf] }
 0x442   : > { %v2521_v62 = vld [vmem:[%s3441_s28 + $0x318] sm:$0xf0] }
 0x443   : > { %1834 = vmatpush.bf16.msrb.mxu1 %v2656_v5  ;;  %1847 = vmatpush.bf16.msra.mxu2 %v2660_v6  ;;  %v2789_v5 = vld [vmem:[%s3441_s28 + $0x7c] sm:$0xf0]  ;;  %v2779_v6 = vld [vmem:[%s3441_s28 + $0x34] sm:$0xf] }
 0x444   : > { %1860 = vmatpush.bf16.msra.mxu3 %v2664_v20  ;;  %1873 = vmatpush.bf16.msra.mxu0 %v2668_v9  ;;  %v2268_v20 = vor.u32 %v2800_v0, %v2265_v1  ;;  %v2183_v9 = vld [vmem:[%s3441_s28 + $0x38] sm:$0xf]  ;;  %v2176_v21 = vor.u32 %v2789_v5, %v2175_v2  ;;  %v2180_v22 = vor.u32 %v2779_v6, %v2177_v7  ;;  %v2431_v1 = vld [vmem:[%s3441_s28 + $0x220] sm:$0xf]  ;;  %v2851_v2 = vld [vmem:[%s3441_s28 + $0x26c] sm:$0xf0] }
 0x445   : > { %v2184_v26 = vor.u32 %v2790_v10, %v2183_v9  ;;  %v2841_v5 = vld [vmem:[%s3441_s28 + $0x224] sm:$0xf]  ;;  %v2433_v6 = vld [vmem:[%s3441_s28 + $0x270] sm:$0xf0]  ;;  %v2439_v7 = vld [vmem:[%s3441_s28 + $0x228] sm:$0xf]  ;;  %v2432_v10 = vor.u32 %v2851_v2, %v2431_v1 }
 0x446   : > { %v2441_v9 = vld [vmem:[%s3441_s28 + $0x278] sm:$0xf0]  ;;  %v2436_v11 = vor.u32 %v2841_v5, %v2433_v6 }
 0x447   : > { %1835 = vmatpush.bf16.msrb.mxu1 %v2576_v18  ;;  %1848 = vmatpush.bf16.msra.mxu2 %v2580_v19  ;;  %v2753_v18 = vld [vmem:[%s3441_s28 + $0x4f0] sm:$0xf0]  ;;  %v2759_v19 = vld [vmem:[%s3441_s28 + $0x4a8] sm:$0xf] }
 0x448   : > { %1861 = vmatpush.bf16.msra.mxu3 %v2584_v23  ;;  %1874 = vmatpush.bf16.msra.mxu0 %v2588_v24  ;;  %v2932_v23 = vld [vmem:[%s3441_s28 + $0x4f4] sm:$0xf0]  ;;  %v2922_v24 = vld [vmem:[%s3441_s28 + $0x4ac] sm:$0xf]  ;;  %v2756_v28 = vor.u32 %v2921_v17, %v2753_v18  ;;  %v2821_v18 = vld [vmem:[%s3441_s28 + $0x184] sm:$0xf] }
 0x449   : > { %v2764_v32 = vor.u32 %v2922_v24, %v2761_v15  ;;  %v2361_v24 = vld [vmem:[%s3441_s28 + $0x1d8] sm:$0xf0]  ;;  %v2352_v15 = vor.u32 %v2831_v13, %v2351_v12 }
 0x44b   : > { %1836 = vmatpush.bf16.msrb.mxu1 %v2496_v30  ;;  %1849 = vmatpush.bf16.msra.mxu2 %v2500_v31  ;;  %v2911_v30 = vld [vmem:[%s3441_s28 + $0x44c] sm:$0xf0]  ;;  %v2760_v31 = vor.u32 %v2932_v23, %v2759_v19  ;;  %v2353_v19 = vld [vmem:[%s3441_s28 + $0x1d0] sm:$0xf0]  ;;  %v2822_v23 = vld [vmem:[%s3441_s28 + $0x18c] sm:$0xf] }
 0x44c   : > { %1862 = vmatpush.bf16.msra.mxu3 %v2504_v34  ;;  %1875 = vmatpush.bf16.msra.mxu0 %v2508_v35  ;;  %v2673_v34 = vld [vmem:[%s3441_s28 + $0x450] sm:$0xf0]  ;;  %v2679_v35 = vld [vmem:[%s3441_s28 + $0x408] sm:$0xf]  ;;  %v2672_v39 = vor.u32 %v2911_v30, %v2671_v29  ;;  %v2364_v29 = vor.u32 %v2822_v23, %v2361_v24  ;;  %v2801_v30 = vld [vmem:[%s3441_s28 + $0xe4] sm:$0xf] }
 0x44d   : > { %v2676_v40 = vor.u32 %v2901_v33, %v2673_v34  ;;  %v2812_v33 = vld [vmem:[%s3441_s28 + $0x134] sm:$0xf0]  ;;  %v2802_v34 = vld [vmem:[%s3441_s28 + $0xec] sm:$0xf] }
 0x44f   : > { %1837 = vmatpush.bf16.msrb.mxu1 %v2416_v42  ;;  %1850 = vmatpush.bf16.msra.mxu2 %v2420_v43  ;;  %v2891_v42 = vld [vmem:[%s3441_s28 + $0x3ac] sm:$0xf0]  ;;  %v2680_v43 = vor.u32 %v2912_v36, %v2679_v35  ;;  %v2281_v35 = vld [vmem:[%s3441_s28 + $0x138] sm:$0xf0] }
 0x450   : > { %1863 = vmatpush.bf16.msra.mxu3 %v2424_v46  ;;  %1876 = vmatpush.bf16.msra.mxu0 %v2428_v47  ;;  %v2593_v46 = vld [vmem:[%s3441_s28 + $0x3b0] sm:$0xf0]  ;;  %v2599_v47 = vld [vmem:[%s3441_s28 + $0x368] sm:$0xf]  ;;  %v2592_v51 = vor.u32 %v2891_v42, %v2591_v41  ;;  %v2284_v41 = vor.u32 %v2802_v34, %v2281_v35  ;;  %v2781_v42 = vld [vmem:[%s3441_s28 + $0x44] sm:$0xf] }
 0x451   : > { %v2596_v52 = vor.u32 %v2881_v45, %v2593_v46  ;;  %v2792_v45 = vld [vmem:[%s3441_s28 + $0x94] sm:$0xf0]  ;;  %v2782_v46 = vld [vmem:[%s3441_s28 + $0x4c] sm:$0xf] }
 0x453   : > { %1838 = vmatpush.bf16.msrb.mxu1 %v2336_v54  ;;  %1851 = vmatpush.bf16.msra.mxu2 %v2340_v55  ;;  %v2871_v54 = vld [vmem:[%s3441_s28 + $0x30c] sm:$0xf0]  ;;  %v2600_v55 = vor.u32 %v2892_v48, %v2599_v47  ;;  %v2201_v47 = vld [vmem:[%s3441_s28 + $0x98] sm:$0xf0] }
 0x454   : > { %1864 = vmatpush.bf16.msra.mxu3 %v2344_v58  ;;  %1877 = vmatpush.bf16.msra.mxu0 %v2348_v59  ;;  %v2513_v58 = vld [vmem:[%s3441_s28 + $0x310] sm:$0xf0]  ;;  %v2519_v59 = vld [vmem:[%s3441_s28 + $0x2c8] sm:$0xf]  ;;  %v2512_v63 = vor.u32 %v2871_v54, %v2511_v53 }
 0x455   : > { %v2516_v0 = vor.u32 %v2861_v57, %v2513_v58 }
 0x457   : > { %1839 = vmatpush.bf16.msrb.mxu1 %v2256_v3  ;;  %1852 = vmatpush.bf16.msra.mxu2 %v2260_v4  ;;  %v2520_v3 = vor.u32 %v2872_v60, %v2519_v59  ;;  %v2524_v4 = vor.u32 %v2862_v61, %v2521_v62 }
 0x458   : > { %1865 = vmatpush.bf16.msra.mxu3 %v2264_v8  ;;  %1878 = vmatpush.bf16.msra.mxu0 %v2268_v20  ;;  %v2852_v8 = vld [vmem:[%s3441_s28 + $0x274] sm:$0xf0]  ;;  %v2842_v20 = vld [vmem:[%s3441_s28 + $0x22c] sm:$0xf] }
 0x459   : > { %v2440_v14 = vor.u32 %v2852_v8, %v2439_v7  ;;  %v2444_v17 = vor.u32 %v2842_v20, %v2441_v9 }
 0x45b   : > { %1840 = vmatpush.bf16.msrb.mxu1 %v2176_v21  ;;  %1853 = vmatpush.bf16.msra.mxu2 %v2180_v22  ;;  %v2359_v21 = vld [vmem:[%s3441_s28 + $0x188] sm:$0xf]  ;;  %v2832_v22 = vld [vmem:[%s3441_s28 + $0x1d4] sm:$0xf0] }
 0x45c   : > { %1866 = vmatpush.bf16.msra.mxu3 %v2184_v26  ;;  %1879 = vmatpush.bf16.msra.mxu0 %v2188_v16  ;;  %v2356_v26 = vor.u32 %v2821_v18, %v2353_v19  ;;  %v2271_v16 = vld [vmem:[%s3441_s28 + $0xe0] sm:$0xf] }
 0x45e   : > { %1841 = vmatmul.bf16.vlgmr.msrb.gmra.mxu1 %v3620_v25  ;;  %1854 = vmatmul.bf16.vlgmr.msra.gmra.mxu2 %v3620_v25 }
 0x45f   : > { %1885 = vmatpush.bf16.msra.mxu1 %v2752_v27  ;;  %1898 = vmatpush.bf16.msrb.mxu2 %v2756_v28  ;;  %v2811_v27 = vld [vmem:[%s3441_s28 + $0x12c] sm:$0xf0]  ;;  %v2360_v28 = vor.u32 %v2832_v22, %v2359_v21 }
 0x460   : > { %1911 = vmatpush.bf16.msrb.mxu3 %v2760_v31  ;;  %1924 = vmatpush.bf16.msrb.mxu0 %v2764_v32  ;;  %v2273_v31 = vld [vmem:[%s3441_s28 + $0x130] sm:$0xf0]  ;;  %v2279_v32 = vld [vmem:[%s3441_s28 + $0xe8] sm:$0xf]  ;;  %v2272_v36 = vor.u32 %v2811_v27, %v2271_v16 }
 0x461   : > { %1867 = vmatmul.bf16.vlgmr.msra.gmra.mxu3 %v3620_v25  ;;  %1880 = vmatmul.bf16.vlgmr.msra.gmra.mxu0 %v3620_v25  ;;  %v2276_v37 = vor.u32 %v2801_v30, %v2273_v31  ;;  %v832_v27 = vld [vmem:[%s3827_s25 + $0x8] sm:$0xff] }
 0x462   : > { %v845_v30 = vperm.slane %v832_v27, 0  ;;  %v848_v31 = vperm.slane %v832_v27, 3 }
 0x463   : > { %1886 = vmatpush.bf16.msra.mxu1 %v2672_v39  ;;  %1899 = vmatpush.bf16.msrb.mxu2 %v2676_v40  ;;  %v2791_v39 = vld [vmem:[%s3441_s28 + $0x8c] sm:$0xf0]  ;;  %v2280_v40 = vor.u32 %v2812_v33, %v2279_v32 }
 0x464   : > { %1912 = vmatpush.bf16.msrb.mxu3 %v2680_v43  ;;  %1925 = vmatpush.bf16.msrb.mxu0 %v2684_v44  ;;  %v2193_v43 = vld [vmem:[%s3441_s28 + $0x90] sm:$0xf0]  ;;  %v2199_v44 = vld [vmem:[%s3441_s28 + $0x48] sm:$0xf]  ;;  %v2192_v48 = vor.u32 %v2791_v39, %v2191_v38  ;;  %v847_v39 = vperm.slane %v832_v27, 2 }
 0x465   : > { %v2196_v49 = vor.u32 %v2781_v42, %v2193_v43  ;;  %v2200_v50 = vor.u32 %v2792_v45, %v2199_v44 }
 0x467   : > { %1887 = vmatpush.bf16.msra.mxu1 %v2592_v51  ;;  %1900 = vmatpush.bf16.msrb.mxu2 %v2596_v52  ;;  %v2204_v51 = vor.u32 %v2782_v46, %v2201_v47  ;;  %v831_v52 = vld [vmem:[%s3827_s25] sm:$0xff] }
 0x468   : > { %1913 = vmatpush.bf16.msrb.mxu3 %v2600_v55  ;;  %1926 = vmatpush.bf16.msrb.mxu0 %v2604_v56  ;;  %v837_v53 = vperm.slane %v831_v52, 0  ;;  %v840_v54 = vperm.slane %v831_v52, 3  ;;  %v838_v60 = vperm.slane %v831_v52, 1  ;;  %v839_v62 = vperm.slane %v831_v52, 2 }
 0x469   : > { %v841_v6 = vperm.slane %v831_v52, 4  ;;  %v844_v8 = vperm.slane %v831_v52, 7  ;;  %v843_v18 = vperm.slane %v831_v52, 6 }
 0x46b   : > { %1888 = vmatpush.bf16.msra.mxu1 %v2512_v63  ;;  %1901 = vmatpush.bf16.msrb.mxu2 %v2516_v0 }
 0x46c   : > { %1914 = vmatpush.bf16.msrb.mxu3 %v2520_v3  ;;  %1927 = vmatpush.bf16.msrb.mxu0 %v2524_v4 }
 0x46f   : > { %1889 = vmatpush.bf16.msra.mxu1 %v2432_v10  ;;  %1902 = vmatpush.bf16.msrb.mxu2 %v2436_v11 }
 0x470   : > { %1915 = vmatpush.bf16.msrb.mxu3 %v2440_v14  ;;  %1928 = vmatpush.bf16.msrb.mxu0 %v2444_v17  ;;  %v842_v14 = vperm.slane %v831_v52, 5 }
 0x473   : > { %1890 = vmatpush.bf16.msra.mxu1 %v2352_v15  ;;  %1903 = vmatpush.bf16.msrb.mxu2 %v2356_v26 }
 0x474   : > { %1916 = vmatpush.bf16.msrb.mxu3 %v2360_v28  ;;  %1929 = vmatpush.bf16.msrb.mxu0 %v2364_v29 }
 0x477   : > { %1891 = vmatpush.bf16.msra.mxu1 %v2272_v36  ;;  %1904 = vmatpush.bf16.msrb.mxu2 %v2276_v37  ;;  %v846_v37 = vperm.slane %v832_v27, 1 }
 0x478   : > { %1917 = vmatpush.bf16.msrb.mxu3 %v2280_v40  ;;  %1930 = vmatpush.bf16.msrb.mxu0 %v2284_v41 }
 0x47b   : > { %1892 = vmatpush.bf16.msra.mxu1 %v2192_v48  ;;  %1905 = vmatpush.bf16.msrb.mxu2 %v2196_v49 }
 0x47c   : > { %1918 = vmatpush.bf16.msrb.mxu3 %v2200_v50  ;;  %1931 = vmatpush.bf16.msrb.mxu0 %v2204_v51  ;;  %v849_v50 = vperm.slane %v832_v27, 4  ;;  %v852_v51 = vperm.slane %v832_v27, 7 }
 0x47e   : > { %1893 = vmatmul.bf16.vlgmr.msra.gmra.mxu1 %v3620_v25  ;;  %1906 = vmatmul.bf16.vlgmr.msrb.gmra.mxu2 %v3620_v25 }
 0x47f   : > { %1919 = vmatmul.bf16.vlgmr.msrb.gmra.mxu3 %v3620_v25  ;;  %1932 = vmatmul.bf16.vlgmr.msrb.gmra.mxu0 %v3620_v25 }
 0x49a   : > { %v1686_v55 = vpop.f32.mrf.mxu1 }
 0x49b   : > { %v1687_v56 = vadd.f32 %v1686_v55, %v837_v53  ;;  %v1725_v57 = vpop.f32.mrf.mxu0 }
 0x49c   : > { %v1726_v58 = vadd.f32 %v1725_v57, %v840_v54  ;;  %v850_v57 = vperm.slane %v832_v27, 5 }
 0x49d   : > { %v1937_v59 = vmax.f32 %v1687_v56, 0.0 }
 0x49e   : > { %v1940_v61 = vmax.f32 %v1726_v58, 0.0 }
 0x49f   : > { %1957 = vst [vmem:[%s3831_s26] sm:$0xff] %v1937_v59  ;;  %v851_v59 = vperm.slane %v832_v27, 6 }
 0x4a0   : > { %1960 = vst [vmem:[%s3831_s26 + $0x18] sm:$0xff] %v1940_v61  ;;  %v1699_v25 = vpop.f32.mrf.mxu2 }
 0x4a1   : > { %v1700_v63 = vadd.f32 %v1699_v25, %v838_v60  ;;  %v1712_v0 = vpop.f32.mrf.mxu3 }
 0x4a2   : > { %v1713_v1 = vadd.f32 %v1712_v0, %v839_v62  ;;  %v1688_v2 = vpop.f32.mrf.mxu1 }
 0x4a3   : > { %v1938_v3 = vmax.f32 %v1700_v63, 0.0  ;;  %v1727_v4 = vpop.f32.mrf.mxu0 }
 0x4a4   : > { %v1939_v5 = vmax.f32 %v1713_v1, 0.0 }
 0x4a5   : > { %1958 = vst [vmem:[%s3831_s26 + $0x8] sm:$0xff] %v1938_v3 }
 0x4a6   : > { %1959 = vst [vmem:[%s3831_s26 + $0x10] sm:$0xff] %v1939_v5  ;;  %v833_v5 = vld [vmem:[%s3827_s25 + $0x10] sm:$0xf] }
 0x4a8   : > { %v1701_v7 = vpop.f32.mrf.mxu2 }
 0x4a9   : > { %v1714_v20 = vpop.f32.mrf.mxu3  ;;  %v856_v7 = vperm.slane %v833_v5, 3 }
 0x4aa   : > { %v1738_v9 = vpop.f32.mrf.mxu1 }
 0x4ab   : > { %v1739_v10 = vadd.f32 %v1738_v9, %v841_v6  ;;  %v1777_v11 = vpop.f32.mrf.mxu0  ;;  %v853_v6 = vperm.slane %v833_v5, 0 }
 0x4ac   : > { %v1778_v12 = vadd.f32 %v1777_v11, %v844_v8 }
 0x4ad   : > { %v1941_v13 = vmax.f32 %v1739_v10, 0.0 }
 0x4ae   : > { %v1944_v17 = vmax.f32 %v1778_v12, 0.0  ;;  %v854_v12 = vperm.slane %v833_v5, 1 }
 0x4af   : > { %1961 = vst [vmem:[%s3831_s26 + $0x20] sm:$0xff] %v1941_v13 }
 0x4b0   : > { %1964 = vst [vmem:[%s3831_s26 + $0x38] sm:$0xff] %v1944_v17  ;;  %v1751_v19 = vpop.f32.mrf.mxu2 }
 0x4b1   : > { %v1752_v21 = vadd.f32 %v1751_v19, %v842_v14  ;;  %v1764_v22 = vpop.f32.mrf.mxu3  ;;  %v855_v14 = vperm.slane %v833_v5, 2 }
 0x4b2   : > { %v1765_v23 = vadd.f32 %v1764_v22, %v843_v18  ;;  %v1740_v24 = vpop.f32.mrf.mxu1 }
 0x4b3   : > { %v1942_v15 = vmax.f32 %v1752_v21, 0.0  ;;  %v1779_v26 = vpop.f32.mrf.mxu0 }
 0x4b4   : > { %v1943_v16 = vmax.f32 %v1765_v23, 0.0 }
 0x4b5   : > { %1962 = vst [vmem:[%s3831_s26 + $0x28] sm:$0xff] %v1942_v15 }
 0x4b6   : > { %1963 = vst [vmem:[%s3831_s26 + $0x30] sm:$0xff] %v1943_v16 }
 0x4b8   : > { %v1753_v28 = vpop.f32.mrf.mxu2 }
 0x4b9   : > { %v1766_v29 = vpop.f32.mrf.mxu3 }
 0x4bb   : > { %v1790_v32 = vpop.f32.mrf.mxu1 }
 0x4bc   : > { %v1791_v33 = vadd.f32 %v1790_v32, %v845_v30 }
 0x4be   : > { %v1829_v34 = vpop.f32.mrf.mxu0  ;;  %v1945_v36 = vmax.f32 %v1791_v33, 0.0 }
 0x4bf   : > { %v1830_v35 = vadd.f32 %v1829_v34, %v848_v31 }
 0x4c0   : > { %1965 = vst [vmem:[%s3831_s26 + $0x40] sm:$0xff] %v1945_v36 }
 0x4c1   : > { %v1948_v38 = vmax.f32 %v1830_v35, 0.0  ;;  %v1803_v40 = vpop.f32.mrf.mxu2 }
 0x4c2   : > { %v1804_v41 = vadd.f32 %v1803_v40, %v846_v37 }
 0x4c3   : > { %1968 = vst [vmem:[%s3831_s26 + $0x58] sm:$0xff] %v1948_v38  ;;  %v1792_v44 = vpop.f32.mrf.mxu1 }
 0x4c4   : > { %v1816_v42 = vpop.f32.mrf.mxu3  ;;  %v1946_v45 = vmax.f32 %v1804_v41, 0.0 }
 0x4c5   : > { %v1817_v43 = vadd.f32 %v1816_v42, %v847_v39 }
 0x4c6   : > { %v1831_v46 = vpop.f32.mrf.mxu0  ;;  %1966 = vst [vmem:[%s3831_s26 + $0x48] sm:$0xff] %v1946_v45 }
 0x4c7   : > { %v1947_v47 = vmax.f32 %v1817_v43, 0.0 }
 0x4c9   : > { %1967 = vst [vmem:[%s3831_s26 + $0x50] sm:$0xff] %v1947_v47  ;;  %v1805_v48 = vpop.f32.mrf.mxu2 }
 0x4cc   : > { %v1818_v49 = vpop.f32.mrf.mxu3 }
 0x4db   : > { %v1842_v52 = vpop.f32.mrf.mxu1 }
 0x4dc   : > { %v1843_v53 = vadd.f32 %v1842_v52, %v849_v50 }
 0x4de   : > { %v1881_v54 = vpop.f32.mrf.mxu0  ;;  %v1949_v56 = vmax.f32 %v1843_v53, 0.0 }
 0x4df   : > { %v1882_v55 = vadd.f32 %v1881_v54, %v852_v51 }
 0x4e0   : > { %1969 = vst [vmem:[%s3831_s26 + $0x60] sm:$0xff] %v1949_v56 }
 0x4e1   : > { %v1952_v58 = vmax.f32 %v1882_v55, 0.0  ;;  %v1855_v60 = vpop.f32.mrf.mxu2 }
 0x4e2   : > { %v1856_v61 = vadd.f32 %v1855_v60, %v850_v57 }
 0x4e3   : > { %1972 = vst [vmem:[%s3831_s26 + $0x78] sm:$0xff] %v1952_v58  ;;  %v1844_v63 = vpop.f32.mrf.mxu1 }
 0x4e4   : > { %v1868_v62 = vpop.f32.mrf.mxu3  ;;  %v1950_v0 = vmax.f32 %v1856_v61, 0.0 }
 0x4e5   : > { %v1869_v25 = vadd.f32 %v1868_v62, %v851_v59 }
 0x4e6   : > { %v1883_v1 = vpop.f32.mrf.mxu0  ;;  %1970 = vst [vmem:[%s3831_s26 + $0x68] sm:$0xff] %v1950_v0 }
 0x4e7   : > { %v1951_v2 = vmax.f32 %v1869_v25, 0.0 }
 0x4e9   : > { %1971 = vst [vmem:[%s3831_s26 + $0x70] sm:$0xff] %v1951_v2  ;;  %v1857_v3 = vpop.f32.mrf.mxu2 }
 0x4ec   : > { %v1870_v4 = vpop.f32.mrf.mxu3 }
 0x4fb   : > { %v1894_v8 = vpop.f32.mrf.mxu1 }
 0x4fc   : > { %v1895_v20 = vadd.f32 %v1894_v8, %v853_v6  ;;  %v1933_v9 = vpop.f32.mrf.mxu0 }
 0x4fd   : > { %v1934_v10 = vadd.f32 %v1933_v9, %v856_v7 }
 0x4fe   : > { %v1953_v11 = vmax.f32 %v1895_v20, 0.0 }
 0x4ff   : > { %v1956_v13 = vmax.f32 %v1934_v10, 0.0 }
 0x500   : > { %1973 = vst [vmem:[%s3831_s26 + $0x80] sm:$0xff] %v1953_v11 }
 0x501   : > { %1976 = vst [vmem:[%s3831_s26 + $0x98] sm:$0xff] %v1956_v13  ;;  %v1907_v17 = vpop.f32.mrf.mxu2 }
 0x502   : > { %v1908_v18 = vadd.f32 %v1907_v17, %v854_v12  ;;  %v1920_v19 = vpop.f32.mrf.mxu3 }
 0x503   : > { %v1921_v21 = vadd.f32 %v1920_v19, %v855_v14  ;;  %v1896_v22 = vpop.f32.mrf.mxu1 }
 0x504   : > { %v1954_v23 = vmax.f32 %v1908_v18, 0.0  ;;  %v1935_v24 = vpop.f32.mrf.mxu0 }
 0x505   : > { %v1955_v15 = vmax.f32 %v1921_v21, 0.0 }
 0x506   : > { %1974 = vst [vmem:[%s3831_s26 + $0x88] sm:$0xff] %v1954_v23  ;;  %1984 = sbr.rel (!%p3341_p11) target bundleno = 1321 (0x529), region = 60 }
 0x507   : > { %1975 = vst [vmem:[%s3831_s26 + $0x90] sm:$0xff] %v1955_v15 }
 0x509   : > { %v1909_v26 = vpop.f32.mrf.mxu2 }
 0x50a   : > { %v1922_v16 = vpop.f32.mrf.mxu3 }
 0x50b   : > { %s3956_s17 = smov (!%p1987_p6, %s1986_s17), 20 }
 0x50c   : > { %s2765_s9 = sshll.u32 %s3956_s17, 3 }
 0x50d   : > { %s1990_s11 = ssub.s32 160, %s2765_s9 }
 0x50e   : > { %s1991_s14 = sshll.u32 %s1990_s11, 4 }
 0x50f   : > { %1992 = vsyncadd %s1978_s24, %s1991_s14  ;;  %p3864_p13 = scmp.ne.s32.totalorder %s2765_s9, 0  ;;  %s2933_s13 = smul.u32 160, %s3310_s22 }
 0x510   : > { %s2769_s15 = sshll.u32 %s3956_s17, 7  ;;  %s1998_s23 = sshll.u32 %s3831_s26, 4  ;;  %s3874_s23 = int_to_ptr.vmem [resolvable:$true] %s1998_s23 }
 0x511   : > { %s1995_s3 = scalar_lea.hbm %s3918_s5, %s2933_s13  ;;  %s3163_s16 = sshra.s32 %s3874_s23, 4  ;;  %s3164_s16 = int_to_ptr.vmem [resolvable:$true] %s3163_s16 }
 0x512   : > { %s2000_s7 = sshll.u32 %s1995_s3, 4  ;;  %s3165_s28 = sshrl.u32 %s2769_s15, 4  ;;  %s2001_s7 = int_to_ptr.hbm [resolvable:$true] %s2000_s7 }
 0x513   : > { %s3170_s10 = scalar_lea.vmem %s3164_s16, %s3165_s28  ;;  %s3258_s22 = smov [#allocation9]  }
 0x514   : > { %p3171_p11 = scmp.ne.s32.totalorder %s3164_s16, %s3170_s10  ;;  %s3174_s12 = scalar_lea.vmem %s3258_s22, 320 }
 0x515   : > { %p3176_p1 = scmp.lt.s32.totalorder %s3174_s12, %s3170_s10 }
 0x516   : > { %p3172_p3 = pnand %p3171_p11, %p3864_p13 }
 0x518   : > { %p3173_p8 = pneg %p3172_p3 }
 0x51a   : > { %p3178_p9 = pnand %p3176_p1, %p3173_p8 }
 0x51c   : > { %3181 = shalt.err (!%p3178_p9)
}
 0x51d   : > { %s3182_s29 = sshra.s32 %s2001_s7, 4  ;;  %s3193_s27 = scalar_lea.hbm %s3918_s5, 632  ;;  %s3183_s29 = int_to_ptr.hbm [resolvable:$true] %s3182_s29 }
 0x51e   : > { %s3189_s25 = scalar_lea.hbm %s3183_s29, %s3165_s28  ;;  %p3194_p2 = scmp.lt.s32.totalorder %s3183_s29, %s3918_s5 }
 0x51f   : > { %p3190_p10 = scmp.ne.s32.totalorder %s3183_s29, %s3189_s25  ;;  %p3195_p4 = scmp.lt.s32.totalorder %s3193_s27, %s3189_s25 }
 0x521   : > { %p3191_p0 = pnand %p3190_p10, %p3864_p13  ;;  %p3196_p5 = por %p3195_p4, %p3194_p2 }
 0x523   : > { %p3192_p7 = pneg %p3191_p0 }
 0x525   : > { %p3197_p6 = pnand %p3196_p5, %p3192_p7 }
 0x527   : > { %3200 = shalt.err (!%p3197_p6)
}
 0x528   : > { %2003 = dma.vmem_to_hbm [thread:$0]  (%p3864_p13), %s3874_s23, %s2769_s15, %s2001_s7, %s1978_s24  }
 0x529 PF: > { %s3948_s14 = sld [smem:[#allocation14_spill]]  ;;  %p2975_p11 = scmp.ge.s32.totalorder %s3248_s21, 2 }
 0x52b   : > { %p2967_p3 = pnand %p2975_p11, %p3345_p12 }
 0x52d   : > { %p2968_p8 = pneg %p2967_p3 }
 0x52f   : > { %s2012_s6 = sand.u32 1, %s3948_s14  }
 0x530   : > { %s2013_s8 = scalar_lea.sflag [#allocation4], %s2012_s6 }
 0x531   : > { %3231 = dma.done.wait (%p2968_p8), %s2013_s8, 2560  }
 0x532   : > { %3233 = vsyncadd (%p2968_p8), %s2013_s8, 4294964736  ;;  %s3950_s21 = sld [smem:[#allocation15_spill]]  ;;  %s3952_s18 = smov %s3240_s19 }
 0x533   : > { %s3951_s30 = sld [smem:[#allocation16_spill]]  ;;  %s3953_s19 = smov %s3244_s20 }
 0x538   : > { %p17_p1 = scmp.ge.s32.totalorder %s3950_s21, 6  }
 0x539   : > { %s3954_s20 = smov %s3951_s30 }
 0x53a   :  { %19 = sbr.rel (!%p17_p1) target bundleno = 8 (0x8), region = 103 }
 0x53f   :  { %2019 = vsyncpa [#allocation3], 1 }
 0x540   :  { %2021 = vsyncpa [#allocation3 + $0x1], 1 }
 0x541   :  { %2022 = vsyncpa [#allocation6], 1 }
 0x542   :  { %2023 = vsyncpa [#allocation4], 1 }
 0x543   :  { %2025 = vsyncpa [#allocation4 + $0x1], 1 }

</bundles_post_ra>
